<compile_context>
chip_gen: v6e
topology: v6e:2x2x1
jax: 0.10.0
libtpu: 0.0.40
codegen_flags: <defaults>
</compile_context>

<pallas_src>
import math

import numpy as np
import jax
import jax.numpy as jnp
from jax.experimental import pallas as pl
from jax.experimental.pallas import tpu as pltpu

# ---------------------------------------------------------------- constants
TOTAL_BONES = 24
N_SAMPLES = 16
MLP_WIDTH = 128
MLP_HIDDEN_LAYERS = 3          # mlp_depth=4 -> 1 input layer + 3 hidden
MLP_OUT = 4
HASH_LEVELS = 16
HASH_FEATS = 2
HASH_LOG2_T = 14
HASH_BASE_RES = 16
HASH_FINEST_RES = 128
INPUT_CH = HASH_LEVELS * HASH_FEATS     # 32, matches CanonicalMLP input_ch
R_TILE = 128                            # rays per grid step (lane dim)
SKIN_TILE = N_SAMPLES * R_TILE          # 2048 points per skin grid step
AUX_ROWS = N_SAMPLES + 8                # 24: z(16) | ray_norm | bg(3) | pad(4)
KICK_IN_ITER = 10000
BBOX_OFFSET = 0.3
SMPL_PARENTS = (-1, 0, 0, 0, 1, 2, 3, 4, 5, 6, 7, 8, 9, 9, 9, 12, 13, 14,
                16, 17, 18, 19, 20, 21)


# ================================================================ kernel 1
# Fused per-point skinning, lane-dense layout:
#   pos_ref [3, PT]  rows = x,y,z  (points on lanes)
#   jb_ref  [24, 4]  per-bone [4jx, 4jy, 4jz, -2|j|^2]
#   rtT_ref [12, 24] transposed per-bone [R(9) | T(3)]
#   bb_ref  [3, 2]   col0 = bbox_min, col1 = 1/(bbox_max - bbox_min)
#   out_ref [3, PT]  bbox-normalized canonical xyz
def _skin_kernel(pos_ref, jb_ref, rtT_ref, bb_ref, out_ref):
    px = pos_ref[0:1, :]
    py = pos_ref[1:2, :]
    pz = pos_ref[2:3, :]

    # softmax logits over 24 bones: (2*p.j - |j|^2)/0.5 (|p|^2 term cancels)
    logits = (jb_ref[:, 0:1] * px + jb_ref[:, 1:2] * py
              + jb_ref[:, 2:3] * pz + jb_ref[:, 3:4])          # [24, PT]
    m = jnp.max(logits, axis=0, keepdims=True)
    e = jnp.exp(logits - m)
    w = e / jnp.sum(e, axis=0, keepdims=True)                  # [24, PT]

    # blended per-point 3x4 transform (row-major R | T), single MXU dot
    blend = jnp.dot(rtT_ref[...], w,
                    preferred_element_type=jnp.float32)        # [12, PT]
    x = blend[0:1, :] * px + blend[1:2, :] * py + blend[2:3, :] * pz + blend[9:10, :]
    y = blend[3:4, :] * px + blend[4:5, :] * py + blend[5:6, :] * pz + blend[10:11, :]
    z = blend[6:7, :] * px + blend[7:8, :] * py + blend[8:9, :] * pz + blend[11:12, :]

    cnl = jnp.concatenate([x, y, z], axis=0)                   # [3, PT]
    out_ref[...] = (cnl - bb_ref[:, 0:1]) * bb_ref[:, 1:2]


def skin_points_T(pos3, joints, motion_Rs, motion_Ts, cnl_bbox):
    """pos3 [3, N] (channels-major) -> bbox-normalized canonical [3, N]."""
    n_pts = pos3.shape[1]
    assert n_pts % SKIN_TILE == 0

    joints = joints.astype(jnp.float32)
    jb = jnp.concatenate(
        [4.0 * joints, -2.0 * jnp.sum(joints * joints, axis=-1, keepdims=True)],
        axis=-1)                                                     # [24, 4]
    rtT = jnp.concatenate(
        [motion_Rs.reshape(TOTAL_BONES, 9), motion_Ts.reshape(TOTAL_BONES, 3)],
        axis=-1).astype(jnp.float32).T                               # [12, 24]
    bmin = cnl_bbox[0].astype(jnp.float32)
    bmax = cnl_bbox[1].astype(jnp.float32)
    bb = jnp.stack([bmin, 1.0 / (bmax - bmin)], axis=-1)             # [3, 2]

    return pl.pallas_call(
        _skin_kernel,
        out_shape=jax.ShapeDtypeStruct((3, n_pts), jnp.float32),
        grid=(n_pts // SKIN_TILE,),
        in_specs=[
            pl.BlockSpec((3, SKIN_TILE), lambda i: (0, i)),
            pl.BlockSpec((TOTAL_BONES, 4), lambda i: (0, 0)),
            pl.BlockSpec((12, TOTAL_BONES), lambda i: (0, 0)),
            pl.BlockSpec((3, 2), lambda i: (0, 0)),
        ],
        out_specs=pl.BlockSpec((3, SKIN_TILE), lambda i: (0, i)),
        compiler_params=pltpu.CompilerParams(
            dimension_semantics=("parallel",)),
    )(pos3.astype(jnp.float32), jb, rtT, bb)


# ================================================================ kernel 2
# Fused CanonicalMLP (depth=4, width=128) + _raw2outputs_norawmask rendering.
# One grid step = 128 rays x 16 samples = 2048 points.
#   emb_ref [32, S*R] bf16, column order = (sample, ray)   (points on lanes)
#   zn_ref  [24, R]   rows 0..15 = z_vals, 16 = |rays_d|, 17..19 = bg/255
#   out_ref [8, R]    rows = (r, g, b, acc, depth, 0, 0, 0)
def _mlp_render_kernel(emb_ref, zn_ref, w0t_ref, b0_ref, wht_ref, bht_ref,
                       wot_ref, bot_ref, out_ref):
    S = N_SAMPLES
    R = R_TILE

    # ---- CanonicalMLP, features on sublanes / points on lanes (lane-dense).
    x = emb_ref[...]                                            # [32, S*R] bf16
    h = jnp.dot(w0t_ref[...], x, preferred_element_type=jnp.float32)
    h = jnp.maximum(h + b0_ref[...], 0.0)
    for l in range(MLP_HIDDEN_LAYERS):
        h = jnp.dot(wht_ref[l], h.astype(jnp.bfloat16),
                    preferred_element_type=jnp.float32)
        h = jnp.maximum(h + bht_ref[l], 0.0)
    raw = jnp.dot(wot_ref[...], h.astype(jnp.bfloat16),
                  preferred_element_type=jnp.float32) + bot_ref[...]  # [4, S*R]

    # ---- volume rendering, rays on lanes (hidden under the MXU work above).
    ray_norm = zn_ref[S:S + 1, :]                               # [1, R]
    bg_r = zn_ref[S + 1:S + 2, :]
    bg_g = zn_ref[S + 2:S + 3, :]
    bg_b = zn_ref[S + 3:S + 4, :]

    trans = jnp.ones((1, R), jnp.float32)                       # running cumprod
    acc_r = jnp.zeros((1, R), jnp.float32)
    acc_g = jnp.zeros((1, R), jnp.float32)
    acc_b = jnp.zeros((1, R), jnp.float32)
    acc_a = jnp.zeros((1, R), jnp.float32)
    acc_d = jnp.zeros((1, R), jnp.float32)
    for s in range(S):                                          # exclusive cumprod
        z_s = zn_ref[s:s + 1, :]
        if s + 1 < S:
            dist = (zn_ref[s + 1:s + 2, :] - z_s) * ray_norm
        else:
            dist = 1e10 * ray_norm
        c0, c1 = s * R, (s + 1) * R
        alpha = 1.0 - jnp.exp(-jnp.maximum(raw[3:4, c0:c1], 0.0) * dist)
        w_s = alpha * trans
        acc_r = acc_r + w_s * jax.nn.sigmoid(raw[0:1, c0:c1])
        acc_g = acc_g + w_s * jax.nn.sigmoid(raw[1:2, c0:c1])
        acc_b = acc_b + w_s * jax.nn.sigmoid(raw[2:3, c0:c1])
        acc_a = acc_a + w_s
        acc_d = acc_d + w_s * z_s
        trans = trans * (1.0 - alpha + 1e-10)

    one_m = 1.0 - acc_a
    out_ref[0:1, :] = acc_r + one_m * bg_r
    out_ref[1:2, :] = acc_g + one_m * bg_g
    out_ref[2:3, :] = acc_b + one_m * bg_b
    out_ref[3:4, :] = acc_a
    out_ref[4:5, :] = acc_d
    out_ref[5:8, :] = jnp.zeros((3, R), jnp.float32)


def mlp_render(embed_T, zn, mlp_params):
    """embed_T [32, R_pad*S] bf16 (tile/sample/ray ordered), zn [24, R_pad]
    -> packed [8, R_pad] (rgb, acc, depth)."""
    n_pts = embed_T.shape[1]
    r_pad = zn.shape[1]
    assert r_pad % R_TILE == 0 and n_pts == r_pad * N_SAMPLES
    n_tiles = r_pad // R_TILE

    w0t = mlp_params["w0"].T.astype(jnp.bfloat16)                       # [128, 32]
    wht = jnp.transpose(mlp_params["wh"], (0, 2, 1)).astype(jnp.bfloat16)
    wot = mlp_params["wo"].T.astype(jnp.bfloat16)                       # [4, 128]
    b0c = mlp_params["b0"].reshape(MLP_WIDTH, 1).astype(jnp.float32)
    bhc = mlp_params["bh"].reshape(MLP_HIDDEN_LAYERS, MLP_WIDTH, 1).astype(jnp.float32)
    boc = mlp_params["bo"].reshape(MLP_OUT, 1).astype(jnp.float32)

    return pl.pallas_call(
        _mlp_render_kernel,
        out_shape=jax.ShapeDtypeStruct((8, r_pad), jnp.float32),
        grid=(n_tiles,),
        in_specs=[
            pl.BlockSpec((INPUT_CH, N_SAMPLES * R_TILE), lambda t: (0, t)),
            pl.BlockSpec((AUX_ROWS, R_TILE), lambda t: (0, t)),
            pl.BlockSpec((MLP_WIDTH, INPUT_CH), lambda t: (0, 0)),
            pl.BlockSpec((MLP_WIDTH, 1), lambda t: (0, 0)),
            pl.BlockSpec((MLP_HIDDEN_LAYERS, MLP_WIDTH, MLP_WIDTH),
                         lambda t: (0, 0, 0)),
            pl.BlockSpec((MLP_HIDDEN_LAYERS, MLP_WIDTH, 1),
                         lambda t: (0, 0, 0)),
            pl.BlockSpec((MLP_OUT, MLP_WIDTH), lambda t: (0, 0)),
            pl.BlockSpec((MLP_OUT, 1), lambda t: (0, 0)),
        ],
        out_specs=pl.BlockSpec((8, R_TILE), lambda t: (0, t)),
        compiler_params=pltpu.CompilerParams(
            dimension_semantics=("parallel",)),
    )(embed_T.astype(jnp.bfloat16), zn.astype(jnp.float32),
      w0t, b0c, wht, bhc, wot, boc)


# ============================================================ plain-JAX glue
def motion_basis_computer(dst_Rs, dst_Ts, cnl_gtfms):
    """dst_Rs [K,3,3], dst_Ts [K,3], cnl_gtfms [K,4,4] -> (scale_Rs, Ts)."""
    K = TOTAL_BONES
    bottom = jnp.tile(jnp.array([[[0., 0., 0., 1.]]], jnp.float32), (K, 1, 1))
    G_local = jnp.concatenate(
        [jnp.concatenate([dst_Rs, dst_Ts[:, :, None]], axis=-1), bottom], axis=1)
    Gs = [G_local[0]]
    for i in range(1, K):
        Gs.append(jnp.matmul(Gs[SMPL_PARENTS[i]], G_local[i]))
    dst_gtfms = jnp.stack(Gs, axis=0)
    # analytic inverse of rigid transforms: [R|t]^-1 = [R^T | -R^T t]
    R = dst_gtfms[:, :3, :3]
    t = dst_gtfms[:, :3, 3:4]
    Rt = jnp.swapaxes(R, 1, 2)
    inv = jnp.concatenate(
        [jnp.concatenate([Rt, -jnp.matmul(Rt, t)], axis=-1), bottom], axis=1)
    f_mtx = jnp.matmul(cnl_gtfms, inv)
    return f_mtx[:, :3, :3], f_mtx[:, :3, 3]


def multires_hash_encode_T(x_T, tables):
    """MultiResHashGrid(3): x_T [3, N] -> embed_T [32, N] bf16 (one fused gather)."""
    L, T, F = HASH_LEVELS, 1 << HASH_LOG2_T, HASH_FEATS
    n = x_T.shape[1]
    x = x_T.T                                                         # [N, 3]
    b = math.exp((math.log(HASH_FINEST_RES) - math.log(HASH_BASE_RES)) / (L - 1))
    res = jnp.asarray([math.floor(HASH_BASE_RES * (b ** l)) for l in range(L)],
                      jnp.float32)                                    # [L]
    primes = np.array([1, 2654435761, 805459861], dtype=np.uint32)
    corners = np.array([[(c >> 0) & 1, (c >> 1) & 1, (c >> 2) & 1]
                        for c in range(8)], np.int32)                 # [8,3]

    xl = x[:, None, :] * res[None, :, None]                           # [N,L,3]
    x0 = jnp.floor(xl)
    frac = xl - x0
    x0i = x0.astype(jnp.int32)

    cpos = x0i[:, :, None, :] + corners[None, None, :, :]             # [N,L,8,3]
    cu = cpos.astype(jnp.uint32)
    h = ((cu[..., 0] * np.uint32(primes[0]))
         ^ (cu[..., 1] * np.uint32(primes[1]))
         ^ (cu[..., 2] * np.uint32(primes[2])))                       # [N,L,8]
    idx = (h % jnp.uint32(T)).astype(jnp.int32)
    flat_idx = idx + (jnp.arange(L, dtype=jnp.int32)[None, :, None] * T)

    feats = jnp.take(tables.reshape(L * T, F), flat_idx.reshape(-1), axis=0)
    feats = feats.reshape(n, L, 8, F).astype(jnp.float32)
    wgt = jnp.prod(jnp.where(corners[None, None, :, :] == 1,
                             frac[:, :, None, :], 1.0 - frac[:, :, None, :]),
                   axis=-1)                                           # [N,L,8]
    out = jnp.sum(wgt[..., None] * feats, axis=2)                     # [N,L,F]
    return out.reshape(n, L * F).T.astype(jnp.bfloat16)               # [32, N]


# ============================================================ parameter init
def init_params(key):
    ks = jax.random.split(key, 8)

    def linear(k, fi, fo):
        kw, kb = jax.random.split(k)
        lim = 1.0 / math.sqrt(fi)
        return (jax.random.uniform(kw, (fi, fo), jnp.float32, -lim, lim),
                jax.random.uniform(kb, (fo,), jnp.float32, -lim, lim))

    w0, b0 = linear(ks[0], INPUT_CH, MLP_WIDTH)
    whs, bhs = [], []
    for i in range(MLP_HIDDEN_LAYERS):
        w, bb = linear(ks[1 + i], MLP_WIDTH, MLP_WIDTH)
        whs.append(w)
        bhs.append(bb)
    wo, bo = linear(ks[4], MLP_WIDTH, MLP_OUT)
    mlp = {"w0": w0, "b0": b0, "wh": jnp.stack(whs), "bh": jnp.stack(bhs),
           "wo": wo, "bo": bo}

    tables = jax.random.uniform(
        ks[5], (HASH_LEVELS, 1 << HASH_LOG2_T, HASH_FEATS), jnp.float32,
        -1e-4, 1e-4).astype(jnp.bfloat16)        # bf16 halves the gather bytes

    canonical_joints = jax.random.normal(ks[6], (TOTAL_BONES, 3)) * 0.4
    cnl_bbox = jnp.stack([jnp.min(canonical_joints, 0) - BBOX_OFFSET,
                          jnp.max(canonical_joints, 0) + BBOX_OFFSET], 0)
    return {"mlp": mlp, "hash_tables": tables,
            "canonical_joints": canonical_joints, "canonical_bbox": cnl_bbox}


# ============================================================ forward pass
def network_forward(params, rays, dst_Rs, dst_Ts, cnl_gtfms,
                    motion_weights_priors, dst_posevec=None, near=None,
                    far=None, bgcolor=None, iter_val=1e7, return_aux=False):
    rays_o, rays_d = rays
    rays_shape = rays_d.shape
    rays_o = rays_o.reshape(-1, 3).astype(jnp.float32)
    rays_d = rays_d.reshape(-1, 3).astype(jnp.float32)
    near = jnp.reshape(near, (-1, 1)).astype(jnp.float32)
    far = jnp.reshape(far, (-1, 1)).astype(jnp.float32)

    # non-rigid MLP input (computed for parity; unused by this network variant)
    if iter_val < KICK_IN_ITER:
        _non_rigid_mlp_input = jnp.zeros_like(dst_posevec) * dst_posevec
    else:
        _non_rigid_mlp_input = dst_posevec

    motion_Rs, motion_Ts = motion_basis_computer(dst_Rs, dst_Ts, cnl_gtfms)

    # pad rays once so every downstream kernel sees aligned lane-dense tiles
    n_rays = rays_o.shape[0]
    r_pad = ((n_rays + R_TILE - 1) // R_TILE) * R_TILE
    pad = r_pad - n_rays
    rays_o_p = jnp.pad(rays_o, ((0, pad), (0, 0)))
    rays_d_p = jnp.pad(rays_d, ((0, pad), (0, 0)))
    near_p = jnp.pad(near, ((0, pad), (0, 0)))
    far_p = jnp.pad(far, ((0, pad), (0, 0)))

    S = N_SAMPLES
    n_tiles = r_pad // R_TILE
    t_vals = jnp.linspace(0.0, 1.0, S, dtype=jnp.float32)
    z_vals = near_p * (1.0 - t_vals) + far_p * t_vals            # [R_pad, S]

    # channels-major, (ray-tile, sample, ray) ordered sample points:
    zt = z_vals.T.reshape(S, n_tiles, R_TILE).transpose(1, 0, 2)   # [nt, S, R]
    ro = rays_o_p.T.reshape(3, n_tiles, 1, R_TILE)
    rd = rays_d_p.T.reshape(3, n_tiles, 1, R_TILE)
    pts_T = ro + rd * zt[None, ...]                                # [3, nt, S, R]
    n_pts = n_tiles * S * R_TILE
    pos3 = pts_T.reshape(3, n_pts)                                 # [3, N]

    cnl_T = skin_points_T(pos3, params["canonical_joints"], motion_Rs,
                          motion_Ts, params["canonical_bbox"])     # [3, N]
    embed_T = multires_hash_encode_T(cnl_T, params["hash_tables"])  # [32, N] bf16

    ray_norm = jnp.sqrt(jnp.sum(rays_d_p * rays_d_p, axis=-1))     # [R_pad]
    bg = bgcolor.astype(jnp.float32).reshape(3) / 255.0
    zn = jnp.concatenate([
        z_vals.T,                                                  # [S, R_pad]
        ray_norm[None, :],                                         # [1, R_pad]
        jnp.broadcast_to(bg[:, None], (3, r_pad)),                 # [3, R_pad]
        jnp.zeros((AUX_ROWS - S - 4, r_pad), jnp.float32),         # pad -> 24
    ], axis=0)

    packed = mlp_render(embed_T, zn, params["mlp"])                # [8, R_pad]

    rgb_map = packed[0:3, :n_rays].T
    acc_map = packed[3, :n_rays]
    depth_map = packed[4, :n_rays]

    out = {
        "rgb": rgb_map.reshape(rays_shape[:-1] + (3,)),
        "alpha": acc_map.reshape(rays_shape[:-1]),
        "depth": depth_map.reshape(rays_shape[:-1]),
    }
    if return_aux:
        out["_aux"] = {"pos_flat": pos3.T, "cnl": cnl_T.T, "embed_T": embed_T,
                       "z_vals": z_vals, "rays_d_pad": rays_d_p,
                       "motion_Rs": motion_Rs, "motion_Ts": motion_Ts}
    return out


# ============================================================ pure-JAX refs
def ref_skin(pos_flat, joints, motion_Rs, motion_Ts, cnl_bbox):
    d2 = jnp.sum((pos_flat[:, None, :] - joints[None, :, :]) ** 2, axis=-1)
    w = jax.nn.softmax(-d2 / 0.5, axis=-1)                             # [N,24]
    pos = jnp.sum(motion_Rs[None, :, :, :] * pos_flat[:, None, None, :],
                  axis=-1) + motion_Ts[None, :, :]                     # [N,24,3]
    cnl = jnp.sum(w[:, :, None] * pos, axis=1) / \
        jnp.maximum(jnp.sum(w, axis=-1, keepdims=True), 1e-4)
    bmin, bmax = cnl_bbox[0], cnl_bbox[1]
    return (cnl - bmin[None, :]) / (bmax - bmin)[None, :]


def ref_mlp(embed, mp):
    h = jnp.dot(embed.astype(jnp.bfloat16), mp["w0"].astype(jnp.bfloat16),
                preferred_element_type=jnp.float32) + mp["b0"][None, :]
    h = jnp.maximum(h, 0.0)
    for l in range(MLP_HIDDEN_LAYERS):
        h = jnp.dot(h.astype(jnp.bfloat16), mp["wh"][l].astype(jnp.bfloat16),
                    preferred_element_type=jnp.float32) + mp["bh"][l][None, :]
        h = jnp.maximum(h, 0.0)
    return jnp.dot(h.astype(jnp.bfloat16), mp["wo"].astype(jnp.bfloat16),
                   preferred_element_type=jnp.float32) + mp["bo"][None, :]


def ref_render(raw, z_vals, rays_d, bgcolor):
    R, S = z_vals.shape
    dists = jnp.concatenate([z_vals[:, 1:] - z_vals[:, :-1],
                             jnp.full((R, 1), 1e10, jnp.float32)], axis=-1)
    dists = dists * jnp.linalg.norm(rays_d, axis=-1, keepdims=True)
    rgb = jax.nn.sigmoid(raw[..., :3])
    alpha = 1.0 - jnp.exp(-jnp.maximum(raw[..., 3], 0.0) * dists)
    trans = jnp.cumprod(jnp.concatenate(
        [jnp.ones((R, 1), jnp.float32), 1.0 - alpha + 1e-10], axis=-1),
        axis=-1)[:, :-1]
    w = alpha * trans
    rgb_map = jnp.sum(w[..., None] * rgb, axis=-2)
    depth = jnp.sum(w * z_vals, axis=-1)
    acc = jnp.sum(w, axis=-1)
    rgb_map = rgb_map + (1.0 - acc[..., None]) * (bgcolor.reshape(3)[None, :] / 255.0)
    return rgb_map, acc, depth


def _assert_close(name, a, b, tol):
    err = float(jnp.max(jnp.abs(a.astype(jnp.float32) - b.astype(jnp.float32))))
    assert err < tol, f"{name}: max abs err {err} >= {tol}"


# ============================================================ small rotations
def _rodrigues(rvec):
    theta = jnp.linalg.norm(rvec, axis=-1, keepdims=True) + 1e-9
    k = rvec / theta
    zeros = jnp.zeros_like(k[..., 0])
    K = jnp.stack([
        jnp.stack([zeros, -k[..., 2], k[..., 1]], -1),
        jnp.stack([k[..., 2], zeros, -k[..., 0]], -1),
        jnp.stack([-k[..., 1], k[..., 0], zeros], -1)], -2)
    th = theta[..., None]
    eye = jnp.eye(3, dtype=rvec.dtype)
    return eye + jnp.sin(th) * K + (1.0 - jnp.cos(th)) * jnp.matmul(K, K)


# ================================================================== main
if __name__ == "__main__":
    root = jax.random.PRNGKey(0)
    k_params, k_data = jax.random.split(root)
    params = init_params(k_params)

    ks = jax.random.split(k_data, 10)
    H, W = 8, 8                                          # 64 rays
    rays_o = jax.random.normal(ks[0], (H, W, 3), jnp.float32) * 0.1
    d = jax.random.normal(ks[1], (H, W, 3), jnp.float32)
    rays_d = d / jnp.linalg.norm(d, axis=-1, keepdims=True)
    near = jnp.full((H * W, 1), 0.5, jnp.float32)
    far = jnp.full((H * W, 1), 2.0, jnp.float32)

    dst_Rs = _rodrigues(jax.random.normal(ks[2], (TOTAL_BONES, 3)) * 0.1)
    dst_Ts = jax.random.normal(ks[3], (TOTAL_BONES, 3)) * 0.05
    cnl_R = _rodrigues(jax.random.normal(ks[4], (TOTAL_BONES, 3)) * 0.05)
    cnl_T = jax.random.normal(ks[5], (TOTAL_BONES, 3)) * 0.05
    bottom = jnp.tile(jnp.array([[[0., 0., 0., 1.]]], jnp.float32),
                      (TOTAL_BONES, 1, 1))
    cnl_gtfms = jnp.concatenate(
        [jnp.concatenate([cnl_R, cnl_T[:, :, None]], -1), bottom], 1)

    motion_weights_priors = jax.random.uniform(
        ks[6], (TOTAL_BONES + 1, 4, 4, 4), jnp.float32)   # accepted, unused here
    dst_posevec = jax.random.normal(ks[7], (69,), jnp.float32) * 0.1
    bgcolor = jnp.array([255.0, 255.0, 255.0], jnp.float32)

    out = network_forward(params, (rays_o, rays_d), dst_Rs, dst_Ts, cnl_gtfms,
                          motion_weights_priors, dst_posevec=dst_posevec,
                          near=near, far=far, bgcolor=bgcolor, iter_val=1e7,
                          return_aux=True)
    jax.block_until_ready(out)

    assert out["rgb"].shape == (H, W, 3)
    assert out["alpha"].shape == (H, W)
    assert out["depth"].shape == (H, W)
    assert bool(jnp.all(jnp.isfinite(out["rgb"])))
    assert bool(jnp.all(jnp.isfinite(out["alpha"])))
    assert bool(jnp.all(jnp.isfinite(out["depth"])))

    # stage-wise / end-to-end verification of the Pallas kernels
    aux = out["_aux"]
    cnl_ref = ref_skin(aux["pos_flat"], params["canonical_joints"],
                       aux["motion_Rs"], aux["motion_Ts"],
                       params["canonical_bbox"])
    _assert_close("skin_kernel", aux["cnl"], cnl_ref, 1e-2)

    # fused MLP+render kernel vs pure-JAX reference (same bf16 embed input)
    r_pad = aux["z_vals"].shape[0]
    nt = r_pad // R_TILE
    raw_ref = ref_mlp(aux["embed_T"].T, params["mlp"])          # [N,4] (t,s,r)
    raw_ray = raw_ref.reshape(nt, N_SAMPLES, R_TILE, 4) \
                     .transpose(0, 2, 1, 3).reshape(r_pad, N_SAMPLES, 4)
    rgb_ref, acc_ref, depth_ref = ref_render(raw_ray, aux["z_vals"],
                                             aux["rays_d_pad"], bgcolor)
    n = H * W
    _assert_close("render_rgb", out["rgb"].reshape(-1, 3), rgb_ref[:n], 5e-3)
    _assert_close("render_acc", out["alpha"].reshape(-1), acc_ref[:n], 5e-3)
    _assert_close("render_depth", out["depth"].reshape(-1), depth_ref[:n], 5e-3)

    print("KERNEL_OK")
</pallas_src>

<mosaic_0001>
module attributes {stable_mosaic.version = 11 : i64} {
  func.func @_skin_kernel(%arg0: i32, %arg1: memref<3x2048xf32, #tpu.memory_space<vmem>>, %arg2: memref<24x4xf32, #tpu.memory_space<vmem>>, %arg3: memref<12x24xf32, #tpu.memory_space<vmem>>, %arg4: memref<3x2xf32, #tpu.memory_space<vmem>>, %arg5: memref<3x2048xf32, #tpu.memory_space<vmem>>) attributes {dimension_semantics = [#tpu.dimension_semantics<parallel>], iteration_bounds = array<i64: 1>, scalar_prefetch = 0 : i64, scratch_operands = 0 : i64, tpu.core_type = #tpu.core_type<tc>, window_params = [{transform_indices = @transform_0, window_bounds = array<i64: 3, 2048>}, {pipeline_mode = #tpu.pipeline_mode<synchronous>, transform_indices = @transform_1, window_bounds = array<i64: 24, 4>}, {pipeline_mode = #tpu.pipeline_mode<synchronous>, transform_indices = @transform_2, window_bounds = array<i64: 12, 24>}, {pipeline_mode = #tpu.pipeline_mode<synchronous>, transform_indices = @transform_3, window_bounds = array<i64: 3, 2>}, {transform_indices = @transform_4, window_bounds = array<i64: 3, 2048>}]} {
    %c0 = arith.constant 0 : index
    %c0_0 = arith.constant 0 : index
    %0 = vector.load %arg1[%c0, %c0_0] : memref<3x2048xf32, #tpu.memory_space<vmem>>, vector<1x2048xf32>
    %c1 = arith.constant 1 : index
    %c0_1 = arith.constant 0 : index
    %1 = vector.load %arg1[%c1, %c0_1] : memref<3x2048xf32, #tpu.memory_space<vmem>>, vector<1x2048xf32>
    %c2 = arith.constant 2 : index
    %c0_2 = arith.constant 0 : index
    %2 = vector.load %arg1[%c2, %c0_2] : memref<3x2048xf32, #tpu.memory_space<vmem>>, vector<1x2048xf32>
    %c0_3 = arith.constant 0 : index
    %c0_4 = arith.constant 0 : index
    %3 = vector.load %arg2[%c0_3, %c0_4] : memref<24x4xf32, #tpu.memory_space<vmem>>, vector<24x1xf32>
    %4 = vector.broadcast %3 : vector<24x1xf32> to vector<24x2048xf32>
    %5 = vector.broadcast %0 : vector<1x2048xf32> to vector<24x2048xf32>
    %6 = arith.mulf %4, %5 : vector<24x2048xf32>
    %c0_5 = arith.constant 0 : index
    %c1_6 = arith.constant 1 : index
    %7 = vector.load %arg2[%c0_5, %c1_6] : memref<24x4xf32, #tpu.memory_space<vmem>>, vector<24x1xf32>
    %8 = vector.broadcast %7 : vector<24x1xf32> to vector<24x2048xf32>
    %9 = vector.broadcast %1 : vector<1x2048xf32> to vector<24x2048xf32>
    %10 = arith.mulf %8, %9 : vector<24x2048xf32>
    %11 = arith.addf %6, %10 : vector<24x2048xf32>
    %c0_7 = arith.constant 0 : index
    %c2_8 = arith.constant 2 : index
    %12 = vector.load %arg2[%c0_7, %c2_8] : memref<24x4xf32, #tpu.memory_space<vmem>>, vector<24x1xf32>
    %13 = vector.broadcast %12 : vector<24x1xf32> to vector<24x2048xf32>
    %14 = vector.broadcast %2 : vector<1x2048xf32> to vector<24x2048xf32>
    %15 = arith.mulf %13, %14 : vector<24x2048xf32>
    %16 = arith.addf %11, %15 : vector<24x2048xf32>
    %c0_9 = arith.constant 0 : index
    %c3 = arith.constant 3 : index
    %17 = vector.load %arg2[%c0_9, %c3] : memref<24x4xf32, #tpu.memory_space<vmem>>, vector<24x1xf32>
    %18 = vector.broadcast %17 : vector<24x1xf32> to vector<24x2048xf32>
    %19 = arith.addf %16, %18 : vector<24x2048xf32>
    %cst = arith.constant dense<0xFF800000> : vector<2048xf32>
    %20 = vector.multi_reduction <maximumf>, %19, %cst [0] : vector<24x2048xf32> to vector<2048xf32>
    %21 = vector.shape_cast %20 : vector<2048xf32> to vector<1x2048xf32>
    %22 = vector.broadcast %21 : vector<1x2048xf32> to vector<24x2048xf32>
    %23 = arith.subf %19, %22 : vector<24x2048xf32>
    %24 = math.exp %23 : vector<24x2048xf32>
    %cst_10 = arith.constant dense<0.000000e+00> : vector<2048xf32>
    %25 = vector.multi_reduction <add>, %24, %cst_10 [0] : vector<24x2048xf32> to vector<2048xf32>
    %26 = vector.shape_cast %25 : vector<2048xf32> to vector<1x2048xf32>
    %27 = vector.broadcast %26 : vector<1x2048xf32> to vector<24x2048xf32>
    %28 = arith.divf %24, %27 : vector<24x2048xf32>
    %c0_11 = arith.constant 0 : index
    %c0_12 = arith.constant 0 : index
    %29 = vector.load %arg3[%c0_11, %c0_12] : memref<12x24xf32, #tpu.memory_space<vmem>>, vector<12x24xf32>
    %cst_13 = arith.constant dense<0.000000e+00> : vector<12x2048xf32>
    %30 = tpu.matmul %29, %28, %cst_13 {dimension_numbers = #tpu.dot_dimension_numbers<[1], [0], [0], [1], [0, 0, 1, 1], [], []>} : vector<12x24xf32>, vector<24x2048xf32>, vector<12x2048xf32> -> vector<12x2048xf32>
    %31 = vector.extract_strided_slice %30 {offsets = [0, 0], sizes = [1, 2048], strides = [1, 1]} : vector<12x2048xf32> to vector<1x2048xf32>
    %32 = arith.mulf %31, %0 : vector<1x2048xf32>
    %33 = vector.extract_strided_slice %30 {offsets = [1, 0], sizes = [1, 2048], strides = [1, 1]} : vector<12x2048xf32> to vector<1x2048xf32>
    %34 = arith.mulf %33, %1 : vector<1x2048xf32>
    %35 = arith.addf %32, %34 : vector<1x2048xf32>
    %36 = vector.extract_strided_slice %30 {offsets = [2, 0], sizes = [1, 2048], strides = [1, 1]} : vector<12x2048xf32> to vector<1x2048xf32>
    %37 = arith.mulf %36, %2 : vector<1x2048xf32>
    %38 = arith.addf %35, %37 : vector<1x2048xf32>
    %39 = vector.extract_strided_slice %30 {offsets = [9, 0], sizes = [1, 2048], strides = [1, 1]} : vector<12x2048xf32> to vector<1x2048xf32>
    %40 = arith.addf %38, %39 : vector<1x2048xf32>
    %41 = vector.extract_strided_slice %30 {offsets = [3, 0], sizes = [1, 2048], strides = [1, 1]} : vector<12x2048xf32> to vector<1x2048xf32>
    %42 = arith.mulf %41, %0 : vector<1x2048xf32>
    %43 = vector.extract_strided_slice %30 {offsets = [4, 0], sizes = [1, 2048], strides = [1, 1]} : vector<12x2048xf32> to vector<1x2048xf32>
    %44 = arith.mulf %43, %1 : vector<1x2048xf32>
    %45 = arith.addf %42, %44 : vector<1x2048xf32>
    %46 = vector.extract_strided_slice %30 {offsets = [5, 0], sizes = [1, 2048], strides = [1, 1]} : vector<12x2048xf32> to vector<1x2048xf32>
    %47 = arith.mulf %46, %2 : vector<1x2048xf32>
    %48 = arith.addf %45, %47 : vector<1x2048xf32>
    %49 = vector.extract_strided_slice %30 {offsets = [10, 0], sizes = [1, 2048], strides = [1, 1]} : vector<12x2048xf32> to vector<1x2048xf32>
    %50 = arith.addf %48, %49 : vector<1x2048xf32>
    %51 = vector.extract_strided_slice %30 {offsets = [6, 0], sizes = [1, 2048], strides = [1, 1]} : vector<12x2048xf32> to vector<1x2048xf32>
    %52 = arith.mulf %51, %0 : vector<1x2048xf32>
    %53 = vector.extract_strided_slice %30 {offsets = [7, 0], sizes = [1, 2048], strides = [1, 1]} : vector<12x2048xf32> to vector<1x2048xf32>
    %54 = arith.mulf %53, %1 : vector<1x2048xf32>
    %55 = arith.addf %52, %54 : vector<1x2048xf32>
    %56 = vector.extract_strided_slice %30 {offsets = [8, 0], sizes = [1, 2048], strides = [1, 1]} : vector<12x2048xf32> to vector<1x2048xf32>
    %57 = arith.mulf %56, %2 : vector<1x2048xf32>
    %58 = arith.addf %55, %57 : vector<1x2048xf32>
    %59 = vector.extract_strided_slice %30 {offsets = [11, 0], sizes = [1, 2048], strides = [1, 1]} : vector<12x2048xf32> to vector<1x2048xf32>
    %60 = arith.addf %58, %59 : vector<1x2048xf32>
    %61 = tpu.concatenate %40, %50, %60 in 0 : vector<1x2048xf32>, vector<1x2048xf32>, vector<1x2048xf32> -> vector<3x2048xf32>
    %c0_14 = arith.constant 0 : index
    %c0_15 = arith.constant 0 : index
    %62 = vector.load %arg4[%c0_14, %c0_15] : memref<3x2xf32, #tpu.memory_space<vmem>>, vector<3x1xf32>
    %63 = vector.broadcast %62 : vector<3x1xf32> to vector<3x2048xf32>
    %64 = arith.subf %61, %63 : vector<3x2048xf32>
    %c0_16 = arith.constant 0 : index
    %c1_17 = arith.constant 1 : index
    %65 = vector.load %arg4[%c0_16, %c1_17] : memref<3x2xf32, #tpu.memory_space<vmem>>, vector<3x1xf32>
    %66 = vector.broadcast %65 : vector<3x1xf32> to vector<3x2048xf32>
    %67 = arith.mulf %64, %66 : vector<3x2048xf32>
    %c0_18 = arith.constant 0 : index
    %c0_19 = arith.constant 0 : index
    %68 = vector.load %arg5[%c0_18, %c0_19] : memref<3x2048xf32, #tpu.memory_space<vmem>>, vector<3x2048xf32>
    tpu.vector_store %arg5[%c0_18, %c0_19], %67 {strides = array<i32>} : memref<3x2048xf32, #tpu.memory_space<vmem>>, vector<3x2048xf32>,
    return
  }
  func.func @transform_0(%arg0: i32) -> (i32, i32) {
    %c0_i32 = arith.constant 0 : i32
    %c0_i32_0 = arith.constant 0 : i32
    return %c0_i32, %arg0 : i32, i32
  }
  func.func @transform_1(%arg0: i32) -> (i32, i32) {
    %c0_i32 = arith.constant 0 : i32
    %c0_i32_0 = arith.constant 0 : i32
    %c0_i32_1 = arith.constant 0 : i32
    return %c0_i32, %c0_i32_0 : i32, i32
  }
  func.func @transform_2(%arg0: i32) -> (i32, i32) {
    %c0_i32 = arith.constant 0 : i32
    %c0_i32_0 = arith.constant 0 : i32
    %c0_i32_1 = arith.constant 0 : i32
    return %c0_i32, %c0_i32_0 : i32, i32
  }
  func.func @transform_3(%arg0: i32) -> (i32, i32) {
    %c0_i32 = arith.constant 0 : i32
    %c0_i32_0 = arith.constant 0 : i32
    %c0_i32_1 = arith.constant 0 : i32
    return %c0_i32, %c0_i32_0 : i32, i32
  }
  func.func @transform_4(%arg0: i32) -> (i32, i32) {
    %c0_i32 = arith.constant 0 : i32
    %c0_i32_0 = arith.constant 0 : i32
    return %c0_i32, %arg0 : i32, i32
  }
}

</mosaic_0001>

<bundles_post_ra>
// kernel: tpu_custom_call.1
= control target key start
LH: loop header
LB: loop body
LE: loop exit
PB: predicated region body
PF: predicated region fallthrough
CT: control target
= control target key end

     0   :  { %9 = vsyncpa [#allocation3], 0  ;;  %s3722_s0 = inlined_call_operand.hbm [shape: f32[3,2048], index: 0, kind: input, shape index: {}]   ;;  %s3723_s1 = inlined_call_operand.vmem [shape: f32[24,4], index: 1, kind: input, shape index: {}]   ;;  %s3724_s2 = inlined_call_operand.vmem [shape: f32[12,24], index: 2, kind: input, shape index: {}]   ;;  %s3725_s3 = inlined_call_operand.vmem [shape: f32[3,2], index: 3, kind: input, shape index: {}]   ;;  %s3726_s4 = inlined_call_operand.hbm [shape: f32[3,2048], index: 4, kind: output, shape index: {}]  }
   0x1   :  { %10 = vsyncpa [#allocation4], 0  ;;  %s2568_s15 = smov [#allocation2]  }
   0x2   :  { %s17_s16 = sshll.u32 %s2568_s15, 4  ;;  %s18_s16 = int_to_ptr.vmem [resolvable:$true] %s17_s16 }
   0x3   :  { %s2532_s17 = scalar_lea.vmem %s18_s16, 1024  ;;  %p2537_p1 = scmp.lt.s32.totalorder %s18_s16, %s18_s16 }
   0x4   :  { %p2533_p0 = scmp.ne.s32.totalorder %s18_s16, %s2532_s17  ;;  %p2538_p2 = scmp.lt.s32.totalorder %s2532_s17, %s2532_s17 }
   0x6   :  { %p2539_p3 = por %p2538_p2, %p2537_p1 }
   0x8   :  { %p2540_p4 = pnand %p2539_p3, %p2533_p0 }
   0xa   :  { %2543 = shalt.err (!%p2540_p4)
}
   0xb   :  { %20 = dma.hbm_to_vmem [thread:$0]  %s3722_s0, 1024, %s18_s16, [#allocation3]  }
   0xc   :  { %2564 = dma.done.wait [#allocation3], 1024  }
   0xd   :  { %2565 = vsyncadd [#allocation3], 4294966272  ;;  %v3727_v0 = vmov 1   ;;  %v2570_v1 = vmov 0   ;;  %v41_v2 = vld [vmem:[%s3723_s1] sm:$0xff]  ;;  %v42_v3 = vld [vmem:[%s3723_s1 + $0x8] sm:$0xff]  ;;  %v61_v7 = vlaneseq }
   0xe   :  { %2385 = vset.pattern.permute.xlu1 %v3727_v0  ;;  %2384 = vset.pattern.permute.xlu0 %v2570_v1  ;;  %v43_v4 = vld [vmem:[%s3723_s1 + $0x10] sm:$0xff]  ;;  %v2571_v5 = vmov 2   ;;  %v2572_v6 = vmov 3   ;;  %v3728_v8 = vmov 0.0   ;;  %vm1095_vm0 = vcmask 195584  }
   0xf   :  { %190 = vperm.xlu1 %2385, %v41_v2   ;;  %46 = vperm.xlu0 %2384, %v41_v2   ;;  %v62_v9 = vshrl.u32 %v61_v7, 7  ;;  %v30_v11 = vld [vmem:[#allocation2] ss:$4 sm:$0xff]  ;;  %v34_v14 = vld [vmem:[#allocation2 + $0x1] ss:$4 sm:$0xff]  ;;  %vm2230_vm1 = vcmask 1040384  }
  0x10   :  { %1166 = vmatprep.mubr.f32.mxu0 %v3728_v8  ;;  %1243 = vmatprep.mubr.f32.mxu1 %v3728_v8  ;;  %v38_v18 = vld [vmem:[#allocation2 + $0x2] ss:$4 sm:$0xff]  ;;  %v2651_v33 = vld [vmem:[#allocation2 + $0x20] ss:$4 sm:$0xff]  ;;  %v36_v38 = vld [vmem:[#allocation2 + $0x21] ss:$4 sm:$0xff] }
  0x11   :  { %v67_v10 = vsub.s32 1, %v62_v9  ;;  %v75_v12 = vsub.s32 3, %v62_v9  ;;  %v63_v13 = vsub.s32 0, %v62_v9  ;;  %v71_v15 = vsub.s32 2, %v62_v9  ;;  %3824 = vst [vmem:[#allocation24_spill] sm:$0xff] %v2651_v33 }
  0x12   :  { %v2616_v16 = vsub.s32 5, %v62_v9  ;;  %v2618_v17 = vsub.s32 7, %v62_v9  ;;  %v2622_v20 = vsub.s32 4, %v62_v9  ;;  %v2638_v28 = vsub.s32 6, %v62_v9  ;;  %v40_v39 = vld [vmem:[#allocation2 + $0x22] ss:$4 sm:$0xff] }
  0x13   :  { %194 = vperm.xlu1 %2385, %v42_v3   ;;  %51 = vperm.xlu0 %2384, %v42_v3   ;;  %v2620_v19 = vrot.slane %v30_v11, %v67_v10  ;;  %v2624_v21 = vrot.slane %v34_v14, %v67_v10  ;;  %v2626_v22 = vrot.slane %v30_v11, %v75_v12  ;;  %vm2247_vm2 = vcmask 1041408  }
  0x14   :  { %3808 = vst [vmem:[#allocation8_spill] sm:$0xff] %v2616_v16  ;;  %3809 = vst [vmem:[#allocation9_spill] sm:$0xff] %v2618_v17  ;;  %v2628_v23 = vrot.slane %v34_v14, %v75_v12  ;;  %v2630_v24 = vrot.slane %v30_v11, %v63_v13  ;;  %v2632_v25 = vrot.slane %v34_v14, %v63_v13 }
  0x15   :  { %3810 = vst [vmem:[#allocation10_spill] sm:$0xff] %v2620_v19  ;;  %3811 = vst [vmem:[#allocation11_spill] sm:$0xff] %v2622_v20  ;;  %v2634_v26 = vrot.slane %v30_v11, %v71_v15  ;;  %v2636_v27 = vrot.slane %v34_v14, %v71_v15  ;;  %v2640_v29 = vrot.slane %v38_v18, %v67_v10 }
  0x16   :  { %3812 = vst [vmem:[#allocation12_spill] sm:$0xff] %v2624_v21  ;;  %3813 = vst [vmem:[#allocation13_spill] sm:$0xff] %v2626_v22  ;;  %v2643_v30 = vrot.slane %v30_v11, %v2616_v16  ;;  %v2646_v31 = vrot.slane %v34_v14, %v2616_v16  ;;  %v2649_v32 = vrot.slane %v30_v11, %v2618_v17 }
  0x17   :  { %198 = vperm.xlu1 %2385, %v43_v4   ;;  %56 = vperm.xlu0 %2384, %v43_v4   ;;  %3814 = vst [vmem:[#allocation14_spill] sm:$0xff] %v2628_v23  ;;  %3815 = vst [vmem:[#allocation15_spill] sm:$0xff] %v2630_v24  ;;  %v2653_v34 = vrot.slane %v38_v18, %v75_v12  ;;  %v2655_v35 = vrot.slane %v38_v18, %v63_v13 }
  0x18   :  { %3816 = vst [vmem:[#allocation16_spill] sm:$0xff] %v2632_v25  ;;  %3817 = vst [vmem:[#allocation17_spill] sm:$0xff] %v2634_v26  ;;  %v2658_v36 = vrot.slane %v34_v14, %v2618_v17  ;;  %v2661_v37 = vrot.slane %v30_v11, %v2622_v20  ;;  %v2663_v40 = vrot.slane %v38_v18, %v71_v15 }
  0x19   :  { %3818 = vst [vmem:[#allocation18_spill] sm:$0xff] %v2636_v27  ;;  %3819 = vst [vmem:[#allocation19_spill] sm:$0xff] %v2638_v28  ;;  %v2666_v41 = vrot.slane %v38_v18, %v2616_v16  ;;  %v2669_v42 = vrot.slane %v38_v18, %v2618_v17  ;;  %v2672_v43 = vrot.slane %v34_v14, %v2622_v20 }
  0x1a   :  { %3820 = vst [vmem:[#allocation20_spill] sm:$0xff] %v2640_v29  ;;  %3821 = vst [vmem:[#allocation21_spill] sm:$0xff] %v2643_v30  ;;  %v2675_v44 = vrot.slane %v38_v18, %v2622_v20  ;;  %v2678_v45 = vrot.slane %v30_v11, %v2638_v28  ;;  %v2681_v46 = vrot.slane %v34_v14, %v2638_v28 }
  0x1b   :  { %2387 = vset.pattern.permute.xlu1 %v2571_v5  ;;  %2386 = vset.pattern.permute.xlu0 %v2571_v5  ;;  %3822 = vst [vmem:[#allocation22_spill] sm:$0xff] %v2646_v31  ;;  %3823 = vst [vmem:[#allocation23_spill] sm:$0xff] %v2649_v32  ;;  %v2684_v47 = vrot.slane %v2651_v33, %v67_v10  ;;  %v2687_v48 = vrot.slane %v38_v18, %v2638_v28 }
  0x1c   :  { %384 = vperm.xlu1 %2387, %v42_v3   ;;  %380 = vperm.xlu0 %2386, %v41_v2   ;;  %3825 = vst [vmem:[#allocation25_spill] sm:$0xff] %v2653_v34  ;;  %3826 = vst [vmem:[#allocation26_spill] sm:$0xff] %v2655_v35  ;;  %v2689_v49 = vrot.slane %v36_v38, %v67_v10  ;;  %v2691_v50 = vrot.slane %v40_v39, %v67_v10 }
  0x1d   :  { %3827 = vst [vmem:[#allocation27_spill] sm:$0xff] %v2658_v36  ;;  %3828 = vst [vmem:[#allocation28_spill] sm:$0xff] %v2661_v37  ;;  %v2694_v51 = vrot.slane %v2651_v33, %v75_v12  ;;  %v2696_v52 = vrot.slane %v36_v38, %v75_v12  ;;  %v2698_v53 = vrot.slane %v40_v39, %v75_v12 }
  0x1e   :  { %3829 = vst [vmem:[#allocation29_spill] sm:$0xff] %v2663_v40  ;;  %3830 = vst [vmem:[#allocation30_spill] sm:$0xff] %v2666_v41  ;;  %v2701_v54 = vrot.slane %v2651_v33, %v63_v13  ;;  %v2703_v55 = vrot.slane %v36_v38, %v63_v13  ;;  %v2705_v56 = vrot.slane %v40_v39, %v63_v13 }
  0x1f   :  { %3831 = vst [vmem:[#allocation31_spill] sm:$0xff] %v2669_v42  ;;  %3832 = vst [vmem:[#allocation32_spill] sm:$0xff] %v2675_v44  ;;  %v2708_v57 = vrot.slane %v2651_v33, %v71_v15  ;;  %v2710_v58 = vrot.slane %v36_v38, %v71_v15  ;;  %v2714_v59 = vrot.slane %v2651_v33, %v2616_v16 }
  0x20   :  { %388 = vperm.xlu1 %2387, %v43_v4   ;;  %2388 = vset.pattern.permute.xlu0 %v2572_v6  ;;  %3833 = vst [vmem:[#allocation33_spill] sm:$0xff] %v2678_v45  ;;  %3834 = vst [vmem:[#allocation34_spill] sm:$0xff] %v2681_v46  ;;  %v2720_v62 = vrot.slane %v40_v39, %v71_v15  ;;  %v2723_v63 = vrot.slane %v36_v38, %v2616_v16 }
  0x21   :  { %570 = vperm.xlu0 %2388, %v41_v2   ;;  %3835 = vst [vmem:[#allocation35_spill] sm:$0xff] %v2684_v47  ;;  %3836 = vst [vmem:[#allocation36_spill] sm:$0xff] %v2687_v48  ;;  %v2730_v2 = vrot.slane %v36_v38, %v2618_v17 }
  0x22   :  { %3837 = vst [vmem:[#allocation37_spill] sm:$0xff] %v2689_v49  ;;  %3838 = vst [vmem:[#allocation38_spill] sm:$0xff] %v2691_v50 }
  0x23   :  { %3839 = vst [vmem:[#allocation39_spill] sm:$0xff] %v2694_v51  ;;  %3840 = vst [vmem:[#allocation40_spill] sm:$0xff] %v2696_v52 }
  0x24   :  { %2389 = vset.pattern.permute.xlu1 %v2572_v6  ;;  %3841 = vst [vmem:[#allocation41_spill] sm:$0xff] %v2698_v53  ;;  %3842 = vst [vmem:[#allocation42_spill] sm:$0xff] %v2701_v54 }
  0x25   :  { %574 = vperm.xlu1 %2389, %v42_v3   ;;  %2390 = vset.pattern.permute.xlu0 %v2570_v1  ;;  %3843 = vst [vmem:[#allocation43_spill] sm:$0xff] %v2703_v55  ;;  %3844 = vst [vmem:[#allocation44_spill] sm:$0xff] %v2705_v56  ;;  %v2727_v1 = vrot.slane %v2651_v33, %v2618_v17 }
  0x26   :  { %3845 = vst [vmem:[#allocation45_spill] sm:$0xff] %v2708_v57  ;;  %3846 = vst [vmem:[#allocation46_spill] sm:$0xff] %v2710_v58 }
  0x27   :  { %3847 = vst [vmem:[#allocation47_spill] sm:$0xff] %v2714_v59  ;;  %3849 = vst [vmem:[#allocation49_spill] sm:$0xff] %v2720_v62 }
  0x28   :  { %3850 = vst [vmem:[#allocation50_spill] sm:$0xff] %v2723_v63  ;;  %3851 = vst [vmem:[#allocation51_spill] sm:$0xff] %v2727_v1 }
  0x29   :  { %578 = vperm.xlu1 %2389, %v43_v4   ;;  %3852 = vst [vmem:[#allocation52_spill] sm:$0xff] %v2730_v2 }
  0x2d   :  { %2391 = vset.pattern.permute.xlu1 %v3727_v0 }
  0x8a   :  { %v2716_v60 = vpop.permute.xlu1 %190  ;;  %v2718_v61 = vpop.permute.xlu0 %46 }
  0x8b   :  { %3848 = vst [vmem:[#allocation48_spill] sm:$0xff] %v2716_v60  ;;  %v142_v3 = vmul.f32 %v2620_v19, %v2718_v61  ;;  %v284_v4 = vmul.f32 %v2624_v21, %v2716_v60  ;;  %v144_v5 = vmul.f32 %v2626_v22, %v2718_v61  ;;  %v286_v6 = vmul.f32 %v2628_v23, %v2716_v60 }
  0x8c   :  { %v141_v7 = vmul.f32 %v2630_v24, %v2718_v61  ;;  %v283_v9 = vmul.f32 %v2632_v25, %v2716_v60  ;;  %v143_v10 = vmul.f32 %v2634_v26, %v2718_v61  ;;  %v285_v11 = vmul.f32 %v2636_v27, %v2716_v60 }
  0x8d   :  { %v332_v12 = vadd.f32 %v284_v4, %v142_v3  ;;  %v334_v13 = vadd.f32 %v286_v6, %v144_v5  ;;  %v146_v14 = vmul.f32 %v2643_v30, %v2718_v61  ;;  %v288_v15 = vmul.f32 %v2646_v31, %v2716_v60 }
  0x8e   :  { %v2752_v18 = vpop.permute.xlu1 %194  ;;  %v2754_v38 = vpop.permute.xlu0 %51  ;;  %v331_v39 = vadd.f32 %v283_v9, %v141_v7  ;;  %v333_v0 = vadd.f32 %v285_v11, %v143_v10  ;;  %v148_v8 = vmul.f32 %v2649_v32, %v2718_v61  ;;  %v290_v28 = vmul.f32 %v2658_v36, %v2716_v60 }
  0x8f   :  { %3853 = vst [vmem:[#allocation53_spill] sm:$0xff] %v2752_v18  ;;  %v158_v3 = vmul.f32 %v2620_v19, %v2754_v38  ;;  %v300_v4 = vmul.f32 %v2624_v21, %v2752_v18  ;;  %v160_v5 = vmul.f32 %v2626_v22, %v2754_v38  ;;  %v302_v6 = vmul.f32 %v2628_v23, %v2752_v18 }
  0x90   :  { %v157_v7 = vmul.f32 %v2630_v24, %v2754_v38  ;;  %v299_v9 = vmul.f32 %v2632_v25, %v2752_v18  ;;  %v159_v10 = vmul.f32 %v2634_v26, %v2754_v38  ;;  %v301_v11 = vmul.f32 %v2636_v27, %v2752_v18 }
  0x91   :  { %v348_v17 = vadd.f32 %v300_v4, %v158_v3  ;;  %v350_v2 = vadd.f32 %v302_v6, %v160_v5  ;;  %v162_v1 = vmul.f32 %v2643_v30, %v2754_v38  ;;  %v304_v16 = vmul.f32 %v2646_v31, %v2752_v18 }
  0x92   :  { %v2780_v63 = vpop.permute.xlu1 %198  ;;  %v2782_v59 = vpop.permute.xlu0 %56  ;;  %v347_v62 = vadd.f32 %v299_v9, %v157_v7  ;;  %v349_v58 = vadd.f32 %v301_v11, %v159_v10  ;;  %v2784_v57 = vadd.f32 %v288_v15, %v146_v14  ;;  %v164_v56 = vmul.f32 %v2649_v32, %v2754_v38 }
  0x93   :  { %3854 = vst [vmem:[#allocation54_spill] sm:$0xff] %v2782_v59  ;;  %v174_v3 = vmul.f32 %v2620_v19, %v2782_v59  ;;  %v316_v4 = vmul.f32 %v2624_v21, %v2780_v63  ;;  %v176_v5 = vmul.f32 %v2626_v22, %v2782_v59  ;;  %v318_v6 = vmul.f32 %v2628_v23, %v2780_v63 }
  0x94   :  { %v173_v7 = vmul.f32 %v2630_v24, %v2782_v59  ;;  %v315_v14 = vmul.f32 %v2632_v25, %v2780_v63  ;;  %v175_v15 = vmul.f32 %v2634_v26, %v2782_v59  ;;  %v317_v9 = vmul.f32 %v2636_v27, %v2780_v63 }
  0x95   :  { %v364_v10 = vadd.f32 %v316_v4, %v174_v3  ;;  %v366_v11 = vadd.f32 %v318_v6, %v176_v5  ;;  %v178_v22 = vmul.f32 %v2643_v30, %v2782_v59  ;;  %v320_v19 = vmul.f32 %v2646_v31, %v2780_v63 }
  0x96   :  { %v363_v23 = vadd.f32 %v315_v14, %v173_v7  ;;  %v365_v21 = vadd.f32 %v317_v9, %v175_v15  ;;  %v352_v24 = vadd.f32 %v304_v16, %v162_v1  ;;  %v180_v25 = vmul.f32 %v2649_v32, %v2782_v59 }
  0x97   :  { %v2810_v55 = vpop.permute.xlu1 %384  ;;  %v2812_v26 = vpop.permute.xlu0 %380  ;;  %v368_v54 = vadd.f32 %v320_v19, %v178_v22  ;;  %v306_v3 = vmul.f32 %v2658_v36, %v2752_v18  ;;  %v322_v4 = vmul.f32 %v2658_v36, %v2780_v63  ;;  %v338_v5 = vadd.f32 %v290_v28, %v148_v8 }
  0x98   :  { %v474_v6 = vmul.f32 %v2640_v29, %v2812_v26  ;;  %v490_v16 = vmul.f32 %v2640_v29, %v2810_v55  ;;  %v476_v1 = vmul.f32 %v2653_v34, %v2812_v26  ;;  %v492_v7 = vmul.f32 %v2653_v34, %v2810_v55 }
  0x99   :  { %v473_v19 = vmul.f32 %v2655_v35, %v2812_v26  ;;  %v489_v22 = vmul.f32 %v2655_v35, %v2810_v55  ;;  %v475_v8 = vmul.f32 %v2663_v40, %v2812_v26  ;;  %v491_v28 = vmul.f32 %v2663_v40, %v2810_v55 }
  0x9a   :  { %v522_v14 = vadd.f32 %v474_v6, %v332_v12  ;;  %v538_v15 = vadd.f32 %v490_v16, %v348_v17  ;;  %v524_v9 = vadd.f32 %v476_v1, %v334_v13  ;;  %v540_v36 = vadd.f32 %v492_v7, %v350_v2 }
  0x9b   :  { %v2834_v32 = vpop.permute.xlu1 %388  ;;  %v521_v30 = vadd.f32 %v473_v19, %v331_v39  ;;  %v537_v31 = vadd.f32 %v489_v22, %v347_v62  ;;  %v523_v27 = vadd.f32 %v475_v8, %v333_v0  ;;  %v539_v53 = vadd.f32 %v491_v28, %v349_v58 }
  0x9c   :  { %v2836_v52 = vpop.permute.xlu0 %570  ;;  %v506_v51 = vmul.f32 %v2640_v29, %v2834_v32  ;;  %v508_v33 = vmul.f32 %v2653_v34, %v2834_v32  ;;  %v505_v12 = vmul.f32 %v2655_v35, %v2834_v32  ;;  %v507_v17 = vmul.f32 %v2663_v40, %v2834_v32 }
  0x9d   :  { %v2847_v2 = vadd.f32 %v2836_v52, %v522_v14  ;;  %v2850_v0 = vadd.f32 %v2836_v52, %v524_v9  ;;  %v2853_v58 = vadd.f32 %v2836_v52, %v521_v30  ;;  %v2856_v62 = vadd.f32 %v2836_v52, %v523_v27 }
  0x9e   :  { %v554_v13 = vadd.f32 %v506_v51, %v364_v10  ;;  %v556_v39 = vadd.f32 %v508_v33, %v366_v11  ;;  %v553_v6 = vadd.f32 %v505_v12, %v363_v23  ;;  %v555_v16 = vadd.f32 %v507_v17, %v365_v21 }
  0x9f   :  { %v478_v1 = vmul.f32 %v2666_v41, %v2812_v26  ;;  %v494_v7 = vmul.f32 %v2666_v41, %v2810_v55  ;;  %v510_v19 = vmul.f32 %v2666_v41, %v2834_v32  ;;  %v354_v22 = vadd.f32 %v306_v3, %v164_v56 }
  0xa0   :  { %v2864_v8 = vpop.permute.xlu1 %574  ;;  %v370_v30 = vadd.f32 %v322_v4, %v180_v25  ;;  %v480_v27 = vmul.f32 %v2669_v42, %v2812_v26  ;;  %v496_v23 = vmul.f32 %v2669_v42, %v2810_v55  ;;  %v512_v21 = vmul.f32 %v2669_v42, %v2834_v32 }
  0xa1   :  { %v2873_v33 = vadd.f32 %v2864_v8, %v538_v15  ;;  %v2876_v51 = vadd.f32 %v2864_v8, %v540_v36  ;;  %v2879_v56 = vadd.f32 %v2864_v8, %v537_v31  ;;  %v2882_v25 = vadd.f32 %v2864_v8, %v539_v53 }
  0xa2   :  { %v526_v10 = vadd.f32 %v478_v1, %v2784_v57  ;;  %v542_v11 = vadd.f32 %v494_v7, %v352_v24  ;;  %v558_v3 = vadd.f32 %v510_v19, %v368_v54  ;;  %v528_v4 = vadd.f32 %v480_v27, %v338_v5 }
  0xa3   :  { %v637_v28 = vmax.f32 %v2847_v2, %v2873_v33  ;;  %v653_v14 = vmax.f32 %v2850_v0, %v2876_v51  ;;  %v629_v36 = vmax.f32 %v2853_v58, %v2879_v56  ;;  %v645_v31 = vmax.f32 %v2856_v62, %v2882_v25 }
  0xa4   :  { %v2893_v15 = vpop.permute.xlu1 %578  ;;  %v2896_v53 = vadd.f32 %v2836_v52, %v526_v10  ;;  %v2899_v24 = vadd.f32 %v2864_v8, %v542_v11  ;;  %v544_v54 = vadd.f32 %v496_v23, %v354_v22  ;;  %v560_v57 = vadd.f32 %v512_v21, %v370_v30 }
  0xa5   :  { %v2902_v5 = vadd.f32 %v2893_v15, %v554_v13  ;;  %v2905_v9 = vadd.f32 %v2893_v15, %v556_v39  ;;  %v2908_v12 = vadd.f32 %v2893_v15, %v553_v6  ;;  %v2911_v17 = vadd.f32 %v2893_v15, %v555_v16 }
  0xa6   :  { %v2914_v1 = vadd.f32 %v2893_v15, %v558_v3  ;;  %v669_v7 = vmax.f32 %v2896_v53, %v2899_v24  ;;  %v2919_v19 = vadd.f32 %v2836_v52, %v528_v4  ;;  %v2922_v13 = vadd.f32 %v2864_v8, %v544_v54 }
  0xa7   :  { %v638_v39 = vmax.f32 %v637_v28, %v2902_v5  ;;  %v654_v6 = vmax.f32 %v653_v14, %v2905_v9  ;;  %v630_v22 = vmax.f32 %v629_v36, %v2908_v12  ;;  %v646_v16 = vmax.f32 %v645_v31, %v2911_v17 }
  0xa8   :  { %v670_v30 = vmax.f32 %v669_v7, %v2914_v1  ;;  %v2930_v27 = vadd.f32 %v2893_v15, %v560_v57  ;;  %v685_v23 = vmax.f32 %v2919_v19, %v2922_v13  ;;  %v145_v21 = vmul.f32 %v2661_v37, %v2718_v61 }
  0xa9   :  { %v639_v10 = vrot.slane %v638_v39, 4  ;;  %v655_v11 = vrot.slane %v654_v6, 4  ;;  %v631_v3 = vrot.slane %v630_v22, 4  ;;  %v647_v4 = vrot.slane %v646_v16, 4 }
  0xaa   :  { %v671_v28 = vrot.slane %v670_v30, 4  ;;  %v686_v14 = vmax.f32 %v685_v23, %v2930_v27  ;;  %v161_v36 = vmul.f32 %v2661_v37, %v2754_v38  ;;  %v177_v31 = vmul.f32 %v2661_v37, %v2782_v59 }
  0xab   :  { %v640_v54 = vmax.f32 %v638_v39, %v639_v10  ;;  %v656_v57 = vmax.f32 %v654_v6, %v655_v11  ;;  %v632_v7 = vmax.f32 %v630_v22, %v631_v3  ;;  %v648_v42 = vmax.f32 %v646_v16, %v647_v4 }
  0xac   :  { %v672_v41 = vmax.f32 %v670_v30, %v671_v28  ;;  %v687_v34 = vrot.slane %v686_v14, 4  ;;  %v287_v29 = vmul.f32 %v2672_v43, %v2716_v60  ;;  %v303_v40 = vmul.f32 %v2672_v43, %v2752_v18 }
  0xad   :  { %v641_v35 = vrot.slane %v640_v54, 2  ;;  %v657_v23 = vrot.slane %v656_v57, 2  ;;  %v633_v20 = vrot.slane %v632_v7, 2  ;;  %v649_v50 = vrot.slane %v648_v42, 2 }
  0xae   :  { %v673_v49 = vrot.slane %v672_v41, 2  ;;  %v688_v47 = vmax.f32 %v686_v14, %v687_v34  ;;  %v319_v39 = vmul.f32 %v2672_v43, %v2780_v63  ;;  %v335_v6 = vadd.f32 %v287_v29, %v145_v21 }
  0xaf   :  { %v642_v22 = vmax.f32 %v640_v54, %v641_v35  ;;  %v658_v16 = vmax.f32 %v656_v57, %v657_v23  ;;  %v634_v30 = vmax.f32 %v632_v7, %v633_v20  ;;  %v650_v10 = vmax.f32 %v648_v42, %v649_v50 }
  0xb0   :  { %v674_v11 = vmax.f32 %v672_v41, %v673_v49  ;;  %v689_v3 = vrot.slane %v688_v47, 2  ;;  %v351_v4 = vadd.f32 %v303_v40, %v161_v36  ;;  %v367_v28 = vadd.f32 %v319_v39, %v177_v31 }
  0xb1   :  { %v643_v37 = vrot.slane %v642_v22, 1  ;;  %v659_v48 = vrot.slane %v658_v16, 1  ;;  %v635_v18 = vrot.slane %v634_v30, 1  ;;  %v651_v46 = vrot.slane %v650_v10, 1 }
  0xb2   :  { %v675_v60 = vrot.slane %v674_v11, 1  ;;  %v690_v59 = vmax.f32 %v688_v47, %v689_v3  ;;  %v477_v34 = vmul.f32 %v2675_v44, %v2812_v26  ;;  %v493_v29 = vmul.f32 %v2675_v44, %v2810_v55 }
  0xb3   :  { %v644_v35 = vmax.f32 %v642_v22, %v643_v37  ;;  %v660_v21 = vmax.f32 %v658_v16, %v659_v48  ;;  %v636_v20 = vmax.f32 %v634_v30, %v635_v18  ;;  %v652_v42 = vmax.f32 %v650_v10, %v651_v46 }
  0xb4   :  { %v676_v41 = vmax.f32 %v674_v11, %v675_v60  ;;  %v691_v49 = vrot.slane %v690_v59, 1  ;;  %v509_v40 = vmul.f32 %v2675_v44, %v2834_v32  ;;  %v525_v50 = vadd.f32 %v477_v34, %v335_v6 }
  0xb5   :  { %v758_v14 = vsub.f32 %v2847_v2, %v644_v35  ;;  %v774_v47 = vsub.f32 %v2873_v33, %v644_v35  ;;  %v790_v36 = vsub.f32 %v2902_v5, %v644_v35  ;;  %v760_v31 = vsub.f32 %v2850_v0, %v660_v21 }
  0xb6   :  { %v776_v54 = vsub.f32 %v2876_v51, %v660_v21  ;;  %v792_v37 = vsub.f32 %v2905_v9, %v660_v21  ;;  %v757_v46 = vsub.f32 %v2853_v58, %v636_v20  ;;  %v773_v48 = vsub.f32 %v2879_v56, %v636_v20 }
  0xb7   :  { %v807_v60 = vmul.f32 1.442695, %v758_v14  ;;  %v839_v18 = vmul.f32 1.442695, %v774_v47  ;;  %v871_v57 = vmul.f32 1.442695, %v790_v36  ;;  %v789_v7 = vsub.f32 %v2908_v12, %v636_v20 }
  0xb8   :  { %v811_v2 = vmul.f32 1.442695, %v760_v31  ;;  %v843_v23 = vmul.f32 1.442695, %v776_v54  ;;  %v875_v33 = vmul.f32 1.442695, %v792_v37  ;;  %v759_v5 = vsub.f32 %v2856_v62, %v652_v42 }
  0xb9   :  { %2393 = vpow2.f32 %v807_v60  ;;  %v805_v0 = vmul.f32 1.442695, %v757_v46  ;;  %v837_v39 = vmul.f32 1.442695, %v773_v48  ;;  %v869_v51 = vmul.f32 1.442695, %v789_v7 }
  0xba   :  { %2395 = vpow2.f32 %v839_v18  ;;  %v775_v9 = vsub.f32 %v2882_v25, %v652_v42  ;;  %v791_v58 = vsub.f32 %v2911_v17, %v652_v42  ;;  %v809_v56 = vmul.f32 1.442695, %v759_v5  ;;  %v3857_v42 = vld [vmem:[#allocation34_spill] sm:$0xff]  ;;  %v3859_v36 = vld [vmem:[#allocation36_spill] sm:$0xff]  ;;  %v3860_v7 = vld [vmem:[#allocation35_spill] sm:$0xff] }
  0xbb   :  { %2397 = vpow2.f32 %v871_v57  ;;  %v762_v6 = vsub.f32 %v2896_v53, %v676_v41  ;;  %v778_v12 = vsub.f32 %v2899_v24, %v676_v41  ;;  %v794_v22 = vsub.f32 %v2914_v1, %v676_v41 }
  0xbc   :  { %2399 = vpow2.f32 %v811_v2  ;;  %v841_v16 = vmul.f32 1.442695, %v775_v9  ;;  %v873_v62 = vmul.f32 1.442695, %v791_v58  ;;  %v692_v30 = vmax.f32 %v690_v59, %v691_v49 }
  0xbd   :  { %2401 = vpow2.f32 %v843_v23  ;;  %v815_v10 = vmul.f32 1.442695, %v762_v6  ;;  %v847_v11 = vmul.f32 1.442695, %v778_v12  ;;  %v879_v3 = vmul.f32 1.442695, %v794_v22 }
  0xbe   :  { %2403 = vpow2.f32 %v875_v33  ;;  %v764_v25 = vsub.f32 %v2919_v19, %v692_v30  ;;  %v780_v17 = vsub.f32 %v2922_v13, %v692_v30  ;;  %v796_v34 = vsub.f32 %v2930_v27, %v692_v30 }
  0xbf   :  { %2405 = vpow2.f32 %v805_v0  ;;  %v541_v53 = vadd.f32 %v493_v29, %v351_v4  ;;  %v557_v24 = vadd.f32 %v509_v40, %v367_v28  ;;  %v2972_v1 = vadd.f32 %v2836_v52, %v525_v50  ;;  %v3855_v4 = vld [vmem:[#allocation54_spill] sm:$0xff]  ;;  %v3856_v29 = vld [vmem:[#allocation48_spill] sm:$0xff]  ;;  %v3858_v40 = vld [vmem:[#allocation53_spill] sm:$0xff] }
  0xc0   :  { %2407 = vpow2.f32 %v837_v39  ;;  %v819_v35 = vmul.f32 1.442695, %v764_v25  ;;  %v851_v59 = vmul.f32 1.442695, %v780_v17  ;;  %v883_v21 = vmul.f32 1.442695, %v796_v34 }
  0xc1   :  { %2409 = vpow2.f32 %v869_v51  ;;  %v2975_v20 = vadd.f32 %v2864_v8, %v541_v53  ;;  %v2978_v19 = vadd.f32 %v2893_v15, %v557_v24  ;;  %v147_v13 = vmul.f32 %v2678_v45, %v2718_v61 }
  0xc2   :  { %2411 = vpow2.f32 %v809_v56  ;;  %v163_v27 = vmul.f32 %v2678_v45, %v2754_v38  ;;  %v179_v28 = vmul.f32 %v2678_v45, %v3855_v4  ;;  %v289_v41 = vmul.f32 %v3857_v42, %v3856_v29 }
  0xc3   :  { %2413 = vpow2.f32 %v841_v16  ;;  %v661_v49 = vmax.f32 %v2972_v1, %v2975_v20  ;;  %v305_v50 = vmul.f32 %v3857_v42, %v3858_v40  ;;  %v321_v14 = vmul.f32 %v3857_v42, %v2780_v63 }
  0xc4   :  { %2415 = vpow2.f32 %v873_v62  ;;  %v337_v47 = vadd.f32 %v289_v41, %v147_v13  ;;  %v479_v31 = vmul.f32 %v3859_v36, %v2812_v26  ;;  %v495_v54 = vmul.f32 %v3859_v36, %v2810_v55  ;;  %v3862_v13 = vld [vmem:[#allocation38_spill] sm:$0xff] }
  0xc5   :  { %2417 = vpow2.f32 %v815_v10  ;;  %v662_v37 = vmax.f32 %v661_v49, %v2978_v19  ;;  %v353_v46 = vadd.f32 %v305_v50, %v163_v27  ;;  %v369_v48 = vadd.f32 %v321_v14, %v179_v28  ;;  %v3861_v10 = vld [vmem:[#allocation37_spill] sm:$0xff] }
  0xc6   :  { %v2999_v60 = vpop.eup %2393  ;;  %2419 = vpow2.f32 %v847_v11  ;;  %v511_v18 = vmul.f32 %v3859_v36, %v2834_v32  ;;  %v527_v57 = vadd.f32 %v479_v31, %v337_v47  ;;  %v150_v2 = vmul.f32 %v3860_v7, %v2718_v61 }
  0xc7   :  { %v3005_v23 = vpop.eup %2395  ;;  %2421 = vpow2.f32 %v879_v3  ;;  %v663_v33 = vrot.slane %v662_v37, 4  ;;  %v543_v5 = vadd.f32 %v495_v54, %v353_v46  ;;  %v166_v0 = vmul.f32 %v3860_v7, %v2754_v38 }
  0xc8   :  { %v3009_v39 = vpop.eup %2397  ;;  %v909_v51 = vadd.f32 %v3005_v23, %v2999_v60  ;;  %2423 = vpow2.f32 %v819_v35  ;;  %v559_v9 = vadd.f32 %v511_v18, %v369_v48  ;;  %v3014_v58 = vadd.f32 %v2836_v52, %v527_v57 }
  0xc9   :  { %v3016_v56 = vpop.eup %2399  ;;  %2425 = vpow2.f32 %v851_v59  ;;  %v664_v6 = vmax.f32 %v662_v37, %v663_v33  ;;  %v3019_v12 = vadd.f32 %v2864_v8, %v543_v5  ;;  %v182_v22 = vmul.f32 %v3860_v7, %v3855_v4 }
  0xca   :  { %v3023_v16 = vpop.eup %2401  ;;  %v910_v62 = vadd.f32 %v3009_v39, %v909_v51  ;;  %2427 = vpow2.f32 %v883_v21  ;;  %v3027_v30 = vadd.f32 %v2893_v15, %v559_v9  ;;  %v292_v11 = vmul.f32 %v3861_v10, %v3856_v29 }
  0xcb   :  { %v3031_v3 = vpop.eup %2403  ;;  %v925_v25 = vadd.f32 %v3023_v16, %v3016_v56  ;;  %v665_v17 = vrot.slane %v664_v6, 2  ;;  %v677_v34 = vmax.f32 %v3014_v58, %v3019_v12  ;;  %v308_v53 = vmul.f32 %v3861_v10, %v3858_v40 }
  0xcc   :  { %v3039_v24 = vpop.eup %2405  ;;  %v911_v35 = vrot.slane %v910_v62, 4  ;;  %v324_v59 = vmul.f32 %v3861_v10, %v2780_v63  ;;  %v340_v21 = vadd.f32 %v292_v11, %v150_v2  ;;  %v482_v27 = vmul.f32 %v3862_v13, %v2812_v26 }
  0xcd   :  { %v3045_v28 = vpop.eup %2407  ;;  %v926_v41 = vadd.f32 %v3031_v3, %v925_v25  ;;  %v666_v49 = vmax.f32 %v664_v6, %v665_v17  ;;  %v678_v50 = vmax.f32 %v677_v34, %v3027_v30  ;;  %v356_v14 = vadd.f32 %v308_v53, %v166_v0 }
  0xce   :  { %v3049_v47 = vpop.eup %2409  ;;  %v912_v31 = vadd.f32 %v911_v35, %v910_v62  ;;  %v901_v54 = vadd.f32 %v3045_v28, %v3039_v24  ;;  %v372_v37 = vadd.f32 %v324_v59, %v182_v22  ;;  %v498_v46 = vmul.f32 %v3862_v13, %v2810_v55 }
  0xcf   :  { %v3055_v48 = vpop.eup %2411  ;;  %v927_v18 = vrot.slane %v926_v41, 4  ;;  %v667_v57 = vrot.slane %v666_v49, 1  ;;  %v679_v2 = vrot.slane %v678_v50, 4  ;;  %v514_v33 = vmul.f32 %v3862_v13, %v2834_v32 }
  0xd0   :  { %v3059_v5 = vpop.eup %2413  ;;  %v913_v0 = vrot.slane %v912_v31, 2  ;;  %v902_v51 = vadd.f32 %v3049_v47, %v901_v54  ;;  %v530_v9 = vadd.f32 %v482_v27, %v340_v21  ;;  %v546_v6 = vadd.f32 %v498_v46, %v356_v14 }
  0xd1   :  { %v3062_v62 = vpop.eup %2415  ;;  %v928_v22 = vadd.f32 %v927_v18, %v926_v41  ;;  %v917_v11 = vadd.f32 %v3059_v5, %v3055_v48  ;;  %v668_v25 = vmax.f32 %v666_v49, %v667_v57  ;;  %v680_v17 = vmax.f32 %v678_v50, %v679_v2 }
  0xd2   :  { %v3066_v34 = vpop.eup %2417  ;;  %v914_v53 = vadd.f32 %v913_v0, %v912_v31  ;;  %v903_v35 = vrot.slane %v902_v51, 4  ;;  %v562_v59 = vadd.f32 %v514_v33, %v372_v37  ;;  %v3069_v7 = vadd.f32 %v2836_v52, %v530_v9 }
  0xd3   :  { %v3071_v13 = vpop.eup %2419  ;;  %v929_v21 = vrot.slane %v928_v22, 2  ;;  %v918_v27 = vadd.f32 %v3062_v62, %v917_v11  ;;  %v761_v41 = vsub.f32 %v2972_v1, %v668_v25  ;;  %v777_v14 = vsub.f32 %v2975_v20, %v668_v25 }
  0xd4   :  { %v3076_v54 = vpop.eup %2421  ;;  %v915_v49 = vrot.slane %v914_v53, 1  ;;  %v904_v50 = vadd.f32 %v903_v35, %v902_v51  ;;  %v941_v31 = vadd.f32 %v3071_v13, %v3066_v34  ;;  %v793_v37 = vsub.f32 %v2978_v19, %v668_v25 }
  0xd5   :  { %v3081_v46 = vpop.eup %2423  ;;  %v930_v18 = vadd.f32 %v929_v21, %v928_v22  ;;  %v919_v57 = vrot.slane %v918_v27, 4  ;;  %v813_v2 = vmul.f32 1.442695, %v761_v41  ;;  %v845_v33 = vmul.f32 1.442695, %v777_v14 }
  0xd6   :  { %v3083_v0 = vpop.eup %2425  ;;  %v916_v1 = vadd.f32 %v915_v49, %v914_v53  ;;  %v905_v9 = vrot.slane %v904_v50, 2  ;;  %v942_v20 = vadd.f32 %v3076_v54, %v941_v31  ;;  %v877_v11 = vmul.f32 1.442695, %v793_v37 }
  0xd7   :  { %v3086_v10 = vpop.eup %2427  ;;  %v931_v51 = vrot.slane %v930_v18, 1  ;;  %v920_v35 = vadd.f32 %v919_v57, %v918_v27  ;;  %v957_v19 = vadd.f32 %v3083_v0, %v3081_v46  ;;  %2429 = vpow2.f32 %v813_v2 }
  0xd8   :  { %2431 = vrcp.f32 %v916_v1  ;;  %v906_v22 = vadd.f32 %v905_v9, %v904_v50  ;;  %v943_v25 = vrot.slane %v942_v20, 4  ;;  %v681_v21 = vrot.slane %v680_v17, 2 }
  0xd9   :  { %v932_v41 = vadd.f32 %v931_v51, %v930_v18  ;;  %v921_v14 = vrot.slane %v920_v35, 2  ;;  %v958_v53 = vadd.f32 %v3086_v10, %v957_v19  ;;  %2433 = vpow2.f32 %v845_v33 }
  0xda   :  { %v907_v49 = vrot.slane %v906_v22, 1  ;;  %v944_v31 = vadd.f32 %v943_v25, %v942_v20  ;;  %2435 = vpow2.f32 %v877_v11  ;;  %v682_v37 = vmax.f32 %v680_v17, %v681_v21  ;;  %v3863_v20 = vld [vmem:[#allocation11_spill] sm:$0xff]  ;;  %v3864_v11 = vld [vmem:[#allocation24_spill] sm:$0xff] }
  0xdb   :  { %2437 = vrcp.f32 %v932_v41  ;;  %v922_v36 = vadd.f32 %v921_v14, %v920_v35  ;;  %v959_v27 = vrot.slane %v958_v53, 4  ;;  %v3092_v57 = vadd.f32 %v2864_v8, %v546_v6  ;;  %v3865_v6 = vld [vmem:[#allocation39_spill] sm:$0xff] }
  0xdc   :  { %v908_v2 = vadd.f32 %v907_v49, %v906_v22  ;;  %v945_v1 = vrot.slane %v944_v31, 2  ;;  %v683_v50 = vrot.slane %v682_v37, 1  ;;  %v3095_v9 = vadd.f32 %v2893_v15, %v562_v59 }
  0xdd   :  { %v923_v18 = vrot.slane %v922_v36, 1  ;;  %v960_v51 = vadd.f32 %v959_v27, %v958_v53  ;;  %v701_v33 = vmax.f32 %v3069_v7, %v3092_v57  ;;  %v3101_v17 = vrot.slane %v3864_v11, %v3863_v20 }
  0xde   :  { %2439 = vrcp.f32 %v908_v2  ;;  %v946_v35 = vadd.f32 %v945_v1, %v944_v31  ;;  %v684_v19 = vmax.f32 %v682_v37, %v683_v50  ;;  %v152_v22 = vmul.f32 %v3865_v6, %v2718_v61  ;;  %v3866_v2 = vld [vmem:[#allocation40_spill] sm:$0xff] }
  0xdf   :  { %v924_v25 = vadd.f32 %v923_v18, %v922_v36  ;;  %v961_v21 = vrot.slane %v960_v51, 2  ;;  %v702_v59 = vmax.f32 %v701_v33, %v3095_v9  ;;  %v168_v41 = vmul.f32 %v3865_v6, %v2754_v38 }
  0xe0   :  { %v947_v14 = vrot.slane %v946_v35, 1  ;;  %v763_v53 = vsub.f32 %v3014_v58, %v684_v19  ;;  %v779_v49 = vsub.f32 %v3019_v12, %v684_v19  ;;  %v795_v27 = vsub.f32 %v3027_v30, %v684_v19  ;;  %v3867_v19 = vld [vmem:[#allocation41_spill] sm:$0xff] }
  0xe1   :  { %2441 = vrcp.f32 %v924_v25  ;;  %v962_v31 = vadd.f32 %v961_v21, %v960_v51  ;;  %v703_v37 = vrot.slane %v702_v59, 4  ;;  %v294_v1 = vmul.f32 %v3866_v2, %v3856_v29 }
  0xe2   :  { %v948_v36 = vadd.f32 %v947_v14, %v946_v35  ;;  %v817_v50 = vmul.f32 1.442695, %v763_v53  ;;  %v849_v18 = vmul.f32 1.442695, %v779_v49  ;;  %v184_v33 = vmul.f32 %v3865_v6, %v3855_v4 }
  0xe3   :  { %v963_v11 = vrot.slane %v962_v31, 1  ;;  %v704_v42 = vmax.f32 %v702_v59, %v703_v37  ;;  %v310_v58 = vmul.f32 %v3866_v2, %v3858_v40  ;;  %v326_v12 = vmul.f32 %v3866_v2, %v2780_v63 }
  0xe4   :  { %v3119_v30 = vpop.eup %2429  ;;  %2443 = vrcp.f32 %v948_v36  ;;  %v881_v51 = vmul.f32 1.442695, %v795_v27  ;;  %v484_v35 = vmul.f32 %v3867_v19, %v2812_v26  ;;  %v500_v25 = vmul.f32 %v3867_v19, %v2810_v55 }
  0xe5   :  { %v2432_v21 = vpop.eup %2431  ;;  %v964_v14 = vadd.f32 %v963_v11, %v962_v31  ;;  %2445 = vpow2.f32 %v817_v50  ;;  %v705_v59 = vrot.slane %v704_v42, 2  ;;  %v342_v53 = vadd.f32 %v294_v1, %v152_v22 }
  0xe6   :  { %v3125_v49 = vpop.eup %2433  ;;  %v1078_v37 = vmul.f32 %v2432_v21, %v3009_v39  ;;  %v1062_v6 = vmul.f32 %v2432_v21, %v3005_v23  ;;  %2447 = vpow2.f32 %v849_v18  ;;  %v358_v36 = vadd.f32 %v310_v58, %v168_v41 }
  0xe7   :  { %v3129_v27 = vpop.eup %2435  ;;  %2449 = vrcp.f32 %v964_v14  ;;  %v933_v2 = vadd.f32 %v3125_v49, %v3119_v30  ;;  %v706_v45 = vmax.f32 %v704_v42, %v705_v59  ;;  %v374_v44 = vadd.f32 %v326_v12, %v184_v33 }
  0xe8   :  { %v2438_v31 = vpop.eup %2437  ;;  %1128 = vmatprep.subr.mxu0 %v1078_v37  ;;  %2451 = vpow2.f32 %v881_v51  ;;  %v516_v22 = vmul.f32 %v3867_v19, %v2834_v32  ;;  %v532_v39 = vadd.f32 %v484_v35, %v342_v53  ;;  %v548_v1 = vadd.f32 %v500_v25, %v358_v36  ;;  %v3869_v53 = vld [vmem:[#allocation43_spill] sm:$0xff] }
  0xe9   :  { %v1080_v23 = vmul.f32 %v2438_v31, %v3031_v3  ;;  %v1064_v41 = vmul.f32 %v2438_v31, %v3023_v16  ;;  %v1032_v50 = vmul.f32 %v2432_v21, %v2999_v60  ;;  %v934_v18 = vadd.f32 %v3129_v27, %v933_v2  ;;  %v3868_v3 = vld [vmem:[#allocation42_spill] sm:$0xff] }
  0xea   :  { %v1036_v42 = vmul.f32 %v2438_v31, %v3016_v56  ;;  %v707_v33 = vrot.slane %v706_v45, 1  ;;  %v564_v11 = vadd.f32 %v516_v22, %v374_v44  ;;  %v3141_v58 = vadd.f32 %v2864_v8, %v548_v1 }
  0xeb   :  { %v2440_v12 = vpop.eup %2439  ;;  %1205 = vmatprep.subr.mxu1 %v1080_v23  ;;  %v935_v51 = vrot.slane %v934_v18, 4  ;;  %v3144_v35 = vadd.f32 %v2836_v52, %v532_v39  ;;  %v149_v16 = vmul.f32 %v3868_v3, %v2718_v61  ;;  %v165_v60 = vmul.f32 %v3868_v3, %v2754_v38 }
  0xec   :  { %v1077_v2 = vmul.f32 %v2440_v12, %v3049_v47  ;;  %v1061_v56 = vmul.f32 %v2440_v12, %v3045_v28  ;;  %v708_v44 = vmax.f32 %v706_v45, %v707_v33  ;;  %v181_v25 = vmul.f32 %v3868_v3, %v3855_v4  ;;  %v3297_v3 = vld [vmem:[#allocation2 + $0x22] ss:$4 sm:$0xff] }
  0xed   :  { %v1030_v21 = vmul.f32 %v2440_v12, %v3039_v24  ;;  %v936_v14 = vadd.f32 %v935_v51, %v934_v18  ;;  %v3156_v59 = vadd.f32 %v2893_v15, %v564_v11  ;;  %v291_v37 = vmul.f32 %v3869_v53, %v3856_v29 }
  0xee   :  { %v2442_v36 = vpop.eup %2441  ;;  %1129 = vmatpush1.msra.mxu0 %v1077_v2  ;;  %v766_v31 = vsub.f32 %v3069_v7, %v708_v44  ;;  %v782_v47 = vsub.f32 %v3092_v57, %v708_v44  ;;  %v798_v45 = vsub.f32 %v3095_v9, %v708_v44  ;;  %v717_v28 = vmax.f32 %v3144_v35, %v3141_v58  ;;  %v3173_v7 = vld [vmem:[%s3724_s2] sm:$0xff] }
  0xef   :  { %v1079_v24 = vmul.f32 %v2442_v36, %v3062_v62  ;;  %1130 = vmatprep.subr.mxu0 %v1062_v6  ;;  %v1063_v22 = vmul.f32 %v2442_v36, %v3059_v5  ;;  %v937_v39 = vrot.slane %v936_v14, 2  ;;  %v307_v1 = vmul.f32 %v3869_v53, %v3858_v40 }
  0xf0   :  { %1131 = vmatpush1.msra.mxu0 %v1061_v56  ;;  %v1034_v23 = vmul.f32 %v2442_v36, %v3055_v48  ;;  %v823_v57 = vmul.f32 1.442695, %v766_v31  ;;  %v855_v9 = vmul.f32 1.442695, %v782_v47  ;;  %v718_v18 = vmax.f32 %v717_v28, %v3156_v59 }
  0xf1   :  { %v2444_v62 = vpop.eup %2443  ;;  %1206 = vmatpush1.msra.mxu1 %v1079_v24  ;;  %1132 = vmatprep.subr.mxu0 %v1032_v50  ;;  %v938_v5 = vadd.f32 %v937_v39, %v936_v14  ;;  %v887_v6 = vmul.f32 1.442695, %v798_v45  ;;  %v323_v33 = vmul.f32 %v3869_v53, %v2780_v63  ;;  %v339_v11 = vadd.f32 %v291_v37, %v149_v16  ;;  %v3872_v24 = vld [vmem:[#allocation45_spill] sm:$0xff] }
  0xf2   :  { %v3178_v12 = vpop.eup %2445  ;;  %1207 = vmatprep.subr.mxu1 %v1064_v41  ;;  %1133 = vmatpush1.msra.mxu0 %v1030_v21  ;;  %v1082_v48 = vmul.f32 %v2444_v62, %v3076_v54  ;;  %v3182_v51 = vmul.f32 %v2444_v62, %v3071_v13  ;;  %v3185_v2 = vmul.f32 %v2444_v62, %v3066_v34  ;;  %2453 = vpow2.f32 %v823_v57  ;;  %v3870_v34 = vld [vmem:[#allocation44_spill] sm:$0xff]  ;;  %v3873_v62 = vld [vmem:[#allocation46_spill] sm:$0xff] }
  0xf3   :  { %v3187_v50 = vpop.eup %2447  ;;  %1208 = vmatpush1.msra.mxu1 %v1063_v22  ;;  %2361 = vmatmul.mubr.msk.f32.vlgmr.msra.gmra.mxu0 %vm1095_vm0, %v3173_v7  ;;  %v939_v16 = vrot.slane %v938_v5, 1  ;;  %2455 = vpow2.f32 %v855_v9  ;;  %v719_v56 = vrot.slane %v718_v18, 4  ;;  %v355_v41 = vadd.f32 %v307_v1, %v165_v60 }
  0xf4   :  { %v2450_v44 = vpop.eup %2449  ;;  %1209 = vmatprep.subr.mxu1 %v1036_v42  ;;  %1282 = vmatprep.subr.mxu0 %v1082_v48  ;;  %v949_v13 = vadd.f32 %v3187_v50, %v3178_v12  ;;  %v371_v54 = vadd.f32 %v323_v33, %v181_v25  ;;  %v481_v21 = vmul.f32 %v3870_v34, %v2812_v26  ;;  %v3871_v60 = vmov 0.0   ;;  %v3205_v42 = vld [vmem:[%s3724_s2 + $0x8] sm:$0xf] }
  0xf5   :  { %v3195_v14 = vpop.eup %2451  ;;  %1210 = vmatpush1.msra.mxu1 %v1034_v23  ;;  %v1084_v37 = vmul.f32 %v2450_v44, %v3086_v10  ;;  %v940_v36 = vadd.f32 %v939_v16, %v938_v5  ;;  %v3199_v31 = vmul.f32 %v2450_v44, %v3083_v0  ;;  %1172 = vmatprep.mubr.f32.mxu0 %v3871_v60  ;;  %2457 = vpow2.f32 %v887_v6 }
  0xf6   :  { %2363 = vmatmul.mubr.msk.f32.vlgmr.msra.gmra.mxu1 %vm1095_vm0, %v3173_v7  ;;  %v950_v25 = vadd.f32 %v3195_v14, %v949_v13  ;;  %v3211_v47 = vmul.f32 %v2450_v44, %v3081_v46  ;;  %v720_v10 = vmax.f32 %v718_v18, %v719_v56  ;;  %v497_v0 = vmul.f32 %v3870_v34, %v2810_v55  ;;  %v3874_v44 = vld [vmem:[#allocation49_spill] sm:$0xff] }
  0xf7   :  { %1359 = vmatprep.subr.mxu1 %v1084_v37  ;;  %2459 = vrcp.f32 %v940_v36  ;;  %1249 = vmatprep.mubr.f32.mxu1 %v3871_v60  ;;  %v513_v45 = vmul.f32 %v3870_v34, %v2834_v32  ;;  %v529_v28 = vadd.f32 %v481_v21, %v339_v11  ;;  %v151_v22 = vmul.f32 %v3872_v24, %v2718_v61 }
  0xf8   :  { %v951_v39 = vrot.slane %v950_v25, 4  ;;  %2362 = vmatmul.mubr.msk.f32.gmra.mxu0 %vm1095_vm0, %v3205_v42  ;;  %v721_v46 = vrot.slane %v720_v10, 2  ;;  %v545_v1 = vadd.f32 %v497_v0, %v355_v41  ;;  %v167_v23 = vmul.f32 %v3872_v24, %v2754_v38 }
  0xf9   :  { %1320 = vmatprep.mubr.f32.mxu0 %v3871_v60  ;;  %v561_v57 = vadd.f32 %v513_v45, %v371_v54  ;;  %v3226_v9 = vadd.f32 %v2836_v52, %v529_v28  ;;  %v183_v18 = vmul.f32 %v3872_v24, %v3855_v4  ;;  %v293_v5 = vmul.f32 %v3873_v62, %v3856_v29 }
  0xfa   :  { %v952_v6 = vadd.f32 %v951_v39, %v950_v25  ;;  %2364 = vmatmul.mubr.msk.f32.gmra.mxu1 %vm1095_vm0, %v3205_v42  ;;  %v722_v33 = vmax.f32 %v720_v10, %v721_v46  ;;  %v3235_v11 = vadd.f32 %v2864_v8, %v545_v1  ;;  %v309_v48 = vmul.f32 %v3873_v62, %v3858_v40  ;;  %v3875_v46 = vld [vmem:[#allocation47_spill] sm:$0xff] }
  0xfb   :  { %1397 = vmatprep.mubr.f32.mxu1 %v3871_v60  ;;  %v3241_v16 = vadd.f32 %v2893_v15, %v561_v57  ;;  %v325_v56 = vmul.f32 %v3873_v62, %v2780_v63  ;;  %v341_v41 = vadd.f32 %v293_v5, %v151_v22  ;;  %v483_v13 = vmul.f32 %v3874_v44, %v2812_v26 }
  0xfc   :  { %v953_v54 = vrot.slane %v952_v6, 2  ;;  %v723_v21 = vrot.slane %v722_v33, 1  ;;  %v693_v37 = vmax.f32 %v3226_v9, %v3235_v11  ;;  %v357_v36 = vadd.f32 %v309_v48, %v167_v23 }
  0xfd   :  { %v373_v25 = vadd.f32 %v325_v56, %v183_v18  ;;  %v499_v10 = vmul.f32 %v3874_v44, %v2810_v55  ;;  %v515_v0 = vmul.f32 %v3874_v44, %v2834_v32  ;;  %v531_v45 = vadd.f32 %v483_v13, %v341_v41 }
  0xfe   :  { %v954_v28 = vadd.f32 %v953_v54, %v952_v6  ;;  %v724_v39 = vmax.f32 %v722_v33, %v723_v21  ;;  %v694_v22 = vmax.f32 %v693_v37, %v3241_v16  ;;  %v154_v1 = vmul.f32 %v3875_v46, %v2718_v61 }
  0xff   :  { %v3256_v57 = vpop.eup %2453  ;;  %v547_v5 = vadd.f32 %v499_v10, %v357_v36  ;;  %v563_v19 = vadd.f32 %v515_v0, %v373_v25  ;;  %v3259_v23 = vadd.f32 %v2836_v52, %v531_v45  ;;  %v170_v18 = vmul.f32 %v3875_v46, %v2754_v38 }
 0x100   :  { %v3263_v48 = vpop.eup %2455  ;;  %v955_v56 = vrot.slane %v954_v28, 1  ;;  %v768_v6 = vsub.f32 %v3144_v35, %v724_v39  ;;  %v784_v33 = vsub.f32 %v3141_v58, %v724_v39  ;;  %v800_v41 = vsub.f32 %v3156_v59, %v724_v39 }
 0x101   :  { %v973_v13 = vadd.f32 %v3263_v48, %v3256_v57  ;;  %v695_v54 = vrot.slane %v694_v22, 4  ;;  %v3271_v21 = vadd.f32 %v2864_v8, %v547_v5  ;;  %v3274_v37 = vadd.f32 %v2893_v15, %v563_v19  ;;  %v3876_v19 = vld [vmem:[#allocation50_spill] sm:$0xff] }
 0x102   :  { %v3276_v36 = vpop.eup %2457  ;;  %v956_v25 = vadd.f32 %v955_v56, %v954_v28  ;;  %v827_v10 = vmul.f32 1.442695, %v768_v6  ;;  %v859_v0 = vmul.f32 1.442695, %v784_v33  ;;  %v891_v35 = vmul.f32 1.442695, %v800_v41 }
 0x103   :  { %v974_v58 = vadd.f32 %v3276_v36, %v973_v13  ;;  %v696_v45 = vmax.f32 %v694_v22, %v695_v54  ;;  %v709_v59 = vmax.f32 %v3259_v23, %v3271_v21  ;;  %v186_v39 = vmul.f32 %v3875_v46, %v3855_v4  ;;  %v2264_v22 = vld [vmem:[%s3725_s3] sm:$0x7]  ;;  %s2574_s3 = smov [#allocation5]  }
 0x104   :  { %v2460_v5 = vpop.eup %2459  ;;  %2461 = vrcp.f32 %v956_v25  ;;  %v296_v24 = vmul.f32 %v3876_v19, %v3856_v29  ;;  %v312_v28 = vmul.f32 %v3876_v19, %v3858_v40  ;;  %v328_v56 = vmul.f32 %v3876_v19, %v2780_v63  ;;  %2267 = vperm.xlu0 %2390, %v2264_v22   ;;  %2287 = vperm.xlu1 %2391, %v2264_v22   ;;  %s2352_s29 = sshll.u32 %s2574_s3, 4  ;;  %s2353_s29 = int_to_ptr.vmem [resolvable:$true] %s2352_s29 }
 0x105   :  { %v1081_v6 = vmul.f32 %v2460_v5, %v3129_v27  ;;  %v1065_v33 = vmul.f32 %v2460_v5, %v3125_v49  ;;  %v1038_v41 = vmul.f32 %v2460_v5, %v3119_v30  ;;  %v975_v13 = vrot.slane %v974_v58, 4  ;;  %v3877_v30 = vld [vmem:[#allocation8_spill] sm:$0xff]  ;;  %s2544_s30 = scalar_lea.vmem %s2353_s29, 1024  ;;  %p2549_p6 = scmp.lt.s32.totalorder %s2353_s29, %s2353_s29 }
 0x106   :  { %2463 = vpow2.f32 %v827_v10  ;;  %v697_v54 = vrot.slane %v696_v45, 2  ;;  %v710_v25 = vmax.f32 %v709_v59, %v3274_v37  ;;  %v344_v46 = vadd.f32 %v296_v24, %v154_v1  ;;  %v3879_v24 = vld [vmem:[#allocation51_spill] sm:$0xff]  ;;  %p2545_p5 = scmp.ne.s32.totalorder %s2353_s29, %s2544_s30  ;;  %p2550_p7 = scmp.lt.s32.totalorder %s2544_s30, %s2544_s30 }
 0x107   :  { %1283 = vmatpush1.msra.mxu0 %v1081_v6  ;;  %v976_v19 = vadd.f32 %v975_v13, %v974_v58  ;;  %2465 = vpow2.f32 %v859_v0  ;;  %v360_v44 = vadd.f32 %v312_v28, %v170_v18  ;;  %v376_v62 = vadd.f32 %v328_v56, %v186_v39  ;;  %v3881_v56 = vld [vmem:[#allocation52_spill] sm:$0xff] }
 0x108   :  { %1284 = vmatprep.subr.mxu0 %v3182_v51  ;;  %2467 = vpow2.f32 %v891_v35  ;;  %v698_v27 = vmax.f32 %v696_v45, %v697_v54  ;;  %v711_v49 = vrot.slane %v710_v25, 4  ;;  %v3301_v5 = vrot.slane %v3297_v3, %v3877_v30  ;;  %p2551_p8 = por %p2550_p7, %p2549_p6 }
 0x109   :  { %1285 = vmatpush1.msra.mxu0 %v1065_v33  ;;  %v977_v10 = vrot.slane %v976_v19, 2  ;;  %v156_v1 = vmul.f32 %v3879_v24, %v2718_v61  ;;  %v172_v18 = vmul.f32 %v3879_v24, %v2754_v38  ;;  %v188_v51 = vmul.f32 %v3879_v24, %v3855_v4 }
 0x10a   :  { %3878 = vst [vmem:[#allocation54_spill] sm:$0xff] %v3301_v5  ;;  %v3880_v0 = vmov 1   ;;  %1286 = vmatprep.subr.mxu0 %v3185_v2  ;;  %v699_v35 = vrot.slane %v698_v27, 1  ;;  %v712_v58 = vmax.f32 %v710_v25, %v711_v49  ;;  %v486_v45 = vmul.f32 %v3301_v5, %v2812_v26  ;;  %p2552_p9 = pnand %p2551_p8, %p2545_p5 }
 0x10b   :  { %2392 = vset.pattern.permute.xlu0 %v3880_v0  ;;  %v502_v59 = vmul.f32 %v3301_v5, %v2810_v55  ;;  %1287 = vmatpush1.msra.mxu0 %v1038_v41  ;;  %v978_v39 = vadd.f32 %v977_v10, %v976_v19  ;;  %v518_v28 = vmul.f32 %v3301_v5, %v2834_v32 }
 0x10c   :  { %v298_v22 = vmul.f32 %v3881_v56, %v3856_v29  ;;  %v314_v6 = vmul.f32 %v3881_v56, %v3858_v40  ;;  %2365 = vmatmul.mubr.msk.f32.vlgmr.msra.gmra.mxu0 %vm1095_vm0, %v3173_v7  ;;  %v700_v2 = vmax.f32 %v698_v27, %v699_v35  ;;  %v713_v33 = vrot.slane %v712_v58, 2 }
 0x10d   :  { %v534_v13 = vadd.f32 %v486_v45, %v344_v46  ;;  %v550_v54 = vadd.f32 %v502_v59, %v360_v44  ;;  %v979_v25 = vrot.slane %v978_v39, 1  ;;  %1326 = vmatprep.mubr.f32.mxu0 %v3871_v60  ;;  %v566_v19 = vadd.f32 %v518_v28, %v376_v62 }
 0x10e   :  { %v330_v41 = vmul.f32 %v3881_v56, %v2780_v63  ;;  %v346_v49 = vadd.f32 %v298_v22, %v156_v1  ;;  %v765_v30 = vsub.f32 %v3226_v9, %v700_v2  ;;  %v781_v10 = vsub.f32 %v3235_v11, %v700_v2 }
 0x10f   :  { %v797_v0 = vsub.f32 %v3241_v16, %v700_v2  ;;  %v714_v24 = vmax.f32 %v712_v58, %v713_v33  ;;  %v980_v5 = vadd.f32 %v979_v25, %v978_v39  ;;  %v3330_v27 = vadd.f32 %v2836_v52, %v534_v13 }
 0x110   :  { %v3333_v44 = vadd.f32 %v2864_v8, %v550_v54  ;;  %v3336_v62 = vadd.f32 %v2893_v15, %v566_v19  ;;  %v821_v46 = vmul.f32 1.442695, %v765_v30  ;;  %v853_v35 = vmul.f32 1.442695, %v781_v10  ;;  %2366 = vmatmul.mubr.msk.f32.gmra.mxu0 %vm1095_vm0, %v3205_v42 }
 0x111   :  { %v885_v1 = vmul.f32 1.442695, %v797_v0  ;;  %v362_v9 = vadd.f32 %v314_v6, %v172_v18  ;;  %v2462_v11 = vpop.eup %2461  ;;  %2469 = vrcp.f32 %v980_v5  ;;  %v715_v16 = vrot.slane %v714_v24, 1  ;;  %1474 = vmatprep.mubr.f32.mxu0 %v3871_v60  ;;  %v3882_v6 = vld [vmem:[#allocation9_spill] sm:$0xff] }
 0x112   :  { %v733_v58 = vmax.f32 %v3330_v27, %v3333_v44  ;;  %v378_v45 = vadd.f32 %v330_v41, %v188_v51  ;;  %v1083_v59 = vmul.f32 %v2462_v11, %v3195_v14  ;;  %v1067_v39 = vmul.f32 %v2462_v11, %v3187_v50 }
 0x113   :  { %v1042_v28 = vmul.f32 %v2462_v11, %v3178_v12  ;;  %2471 = vpow2.f32 %v821_v46  ;;  %v3346_v22 = vpop.eup %2463  ;;  %v716_v18 = vmax.f32 %v714_v24, %v715_v16  ;;  %v3351_v2 = vrot.slane %v3297_v3, %v3882_v6  ;;  %v3379_v16 = vld [vmem:[#allocation2 + $0x21] ss:$4 sm:$0xff] }
 0x114   :  { %2473 = vpow2.f32 %v853_v35  ;;  %v734_v5 = vmax.f32 %v733_v58, %v3336_v62  ;;  %v3353_v51 = vpop.eup %2465  ;;  %1360 = vmatpush1.msra.mxu1 %v1083_v59  ;;  %v153_v50 = vmul.f32 %v3101_v17, %v2718_v61  ;;  %v169_v12 = vmul.f32 %v3101_v17, %v2754_v38 }
 0x115   :  { %3883 = vst [vmem:[#allocation48_spill] sm:$0xff] %v3351_v2  ;;  %2475 = vpow2.f32 %v885_v1  ;;  %v185_v14 = vmul.f32 %v3101_v17, %v3855_v4  ;;  %v3361_v24 = vpop.eup %2467  ;;  %1361 = vmatprep.subr.mxu1 %v3199_v31  ;;  %v989_v33 = vadd.f32 %v3353_v51, %v3346_v22  ;;  %v767_v13 = vsub.f32 %v3259_v23, %v716_v18 }
 0x116   :  { %v783_v54 = vsub.f32 %v3271_v21, %v716_v18  ;;  %v799_v25 = vsub.f32 %v3274_v37, %v716_v18  ;;  %1362 = vmatpush1.msra.mxu1 %v1067_v39  ;;  %v735_v19 = vrot.slane %v734_v5, 4  ;;  %v488_v41 = vmul.f32 %v3351_v2, %v2812_v26 }
 0x117   :  { %v504_v30 = vmul.f32 %v3351_v2, %v2810_v55  ;;  %v520_v31 = vmul.f32 %v3351_v2, %v2834_v32  ;;  %1363 = vmatprep.subr.mxu1 %v3211_v47  ;;  %v990_v10 = vadd.f32 %v3361_v24, %v989_v33  ;;  %v825_v23 = vmul.f32 1.442695, %v767_v13 }
 0x118   :  { %v857_v0 = vmul.f32 1.442695, %v783_v54  ;;  %v889_v21 = vmul.f32 1.442695, %v799_v25  ;;  %1364 = vmatpush1.msra.mxu1 %v1042_v28  ;;  %v736_v37 = vmax.f32 %v734_v5, %v735_v19  ;;  %v536_v46 = vadd.f32 %v488_v41, %v346_v49 }
 0x119   :  { %v552_v35 = vadd.f32 %v504_v30, %v362_v9  ;;  %v568_v1 = vadd.f32 %v520_v31, %v378_v45  ;;  %v991_v11 = vrot.slane %v990_v10, 4  ;;  %2367 = vmatmul.mubr.msk.f32.vlgmr.msra.gmra.mxu1 %vm1095_vm0, %v3173_v7  ;;  %2477 = vpow2.f32 %v825_v23 }
 0x11a   :  { %v3383_v47 = vrot.slane %v3379_v16, %v3863_v20  ;;  %v3387_v58 = vrot.slane %v3297_v3, %v3863_v20  ;;  %2479 = vpow2.f32 %v857_v0  ;;  %1403 = vmatprep.mubr.f32.mxu1 %v3871_v60  ;;  %v737_v49 = vrot.slane %v736_v37, 2 }
 0x11b   :  { %v3391_v9 = vadd.f32 %v2836_v52, %v536_v46  ;;  %v3394_v45 = vadd.f32 %v2864_v8, %v552_v35  ;;  %v992_v59 = vadd.f32 %v991_v11, %v990_v10  ;;  %2481 = vpow2.f32 %v889_v21 }
 0x11c   :  { %v3397_v39 = vadd.f32 %v2893_v15, %v568_v1  ;;  %v295_v28 = vmul.f32 %v3383_v47, %v3856_v29  ;;  %v738_v20 = vmax.f32 %v736_v37, %v737_v49  ;;  %v311_v5 = vmul.f32 %v3383_v47, %v3858_v40 }
 0x11d   :  { %v749_v18 = vmax.f32 %v3391_v9, %v3394_v45  ;;  %v327_v6 = vmul.f32 %v3383_v47, %v2780_v63  ;;  %v993_v33 = vrot.slane %v992_v59, 2  ;;  %2368 = vmatmul.mubr.msk.f32.gmra.mxu1 %vm1095_vm0, %v3205_v42  ;;  %v485_v13 = vmul.f32 %v3387_v58, %v2812_v26 }
 0x11e   :  { %v501_v54 = vmul.f32 %v3387_v58, %v2810_v55  ;;  %v3413_v25 = vpop.eup %2469  ;;  %v739_v19 = vrot.slane %v738_v20, 1  ;;  %1551 = vmatprep.mubr.f32.mxu1 %v3871_v60  ;;  %v343_v30 = vadd.f32 %v295_v28, %v153_v50  ;;  %v359_v0 = vadd.f32 %v311_v5, %v169_v12 }
 0x11f   :  { %v750_v41 = vmax.f32 %v749_v18, %v3397_v39  ;;  %v1086_v10 = vmul.f32 %v3413_v25, %v3276_v36  ;;  %v994_v23 = vadd.f32 %v993_v33, %v992_v59  ;;  %v375_v21 = vadd.f32 %v327_v6, %v185_v14  ;;  %v2523_v36 = vld [vmem:[#allocation2 + $0x20] ss:$4 sm:$0xff] }
 0x120   :  { %v3417_v31 = vpop.eup %2471  ;;  %v740_v46 = vmax.f32 %v738_v20, %v739_v19  ;;  %v517_v1 = vmul.f32 %v3387_v58, %v2834_v32  ;;  %v533_v11 = vadd.f32 %v485_v13, %v343_v30  ;;  %v549_v18 = vadd.f32 %v501_v54, %v359_v0  ;;  %v3884_v59 = vld [vmem:[#allocation19_spill] sm:$0xff] }
 0x121   :  { %v3421_v37 = vpop.eup %2473  ;;  %v751_v35 = vrot.slane %v750_v41, 4  ;;  %1436 = vmatprep.subr.mxu0 %v1086_v10  ;;  %v995_v50 = vrot.slane %v994_v23, 1  ;;  %v3430_v12 = vrot.slane %v2523_v36, %v3884_v59 }
 0x122   :  { %v3425_v49 = vpop.eup %2475  ;;  %v965_v28 = vadd.f32 %v3421_v37, %v3417_v31  ;;  %v770_v14 = vsub.f32 %v3330_v27, %v740_v46  ;;  %v786_v20 = vsub.f32 %v3333_v44, %v740_v46  ;;  %v802_v5 = vsub.f32 %v3336_v62, %v740_v46 }
 0x123   :  { %v752_v6 = vmax.f32 %v750_v41, %v751_v35  ;;  %v996_v33 = vadd.f32 %v995_v50, %v994_v23  ;;  %v565_v19 = vadd.f32 %v517_v1, %v375_v21  ;;  %v3437_v30 = vadd.f32 %v2836_v52, %v533_v11 }
 0x124   :  { %v966_v13 = vadd.f32 %v3425_v49, %v965_v28  ;;  %v831_v10 = vmul.f32 1.442695, %v770_v14  ;;  %v863_v54 = vmul.f32 1.442695, %v786_v20  ;;  %v895_v0 = vmul.f32 1.442695, %v802_v5 }
 0x125   :  { %v3440_v36 = vadd.f32 %v2864_v8, %v549_v18  ;;  %2483 = vrcp.f32 %v996_v33  ;;  %v753_v2 = vrot.slane %v752_v6, 2  ;;  %v3443_v44 = vadd.f32 %v2893_v15, %v565_v19 }
 0x126   :  { %v967_v27 = vrot.slane %v966_v13, 4  ;;  %v3445_v62 = vpop.eup %2477  ;;  %2485 = vpow2.f32 %v831_v10  ;;  %v155_v50 = vmul.f32 %v3430_v12, %v2718_v61  ;;  %v3460_v28 = vrot.slane %v3379_v16, %v3884_v59 }
 0x127   :  { %v725_v41 = vmax.f32 %v3437_v30, %v3440_v36  ;;  %v3449_v23 = vpop.eup %2479  ;;  %2487 = vpow2.f32 %v863_v54  ;;  %v754_v46 = vmax.f32 %v752_v6, %v753_v2  ;;  %v3464_v2 = vrot.slane %v3297_v3, %v3884_v59 }
 0x128   :  { %v968_v21 = vadd.f32 %v967_v27, %v966_v13  ;;  %v3451_v35 = vpop.eup %2481  ;;  %v981_v1 = vadd.f32 %v3449_v23, %v3445_v62  ;;  %2489 = vpow2.f32 %v895_v0  ;;  %v171_v6 = vmul.f32 %v3430_v12, %v2754_v38 }
 0x129   :  { %v726_v11 = vmax.f32 %v725_v41, %v3443_v44  ;;  %v755_v14 = vrot.slane %v754_v46, 1  ;;  %v297_v61 = vmul.f32 %v3460_v28, %v3856_v29  ;;  %v187_v16 = vmul.f32 %v3430_v12, %v3855_v4 }
 0x12a   :  { %v969_v18 = vrot.slane %v968_v21, 2  ;;  %v982_v20 = vadd.f32 %v3451_v35, %v981_v1  ;;  %v313_v19 = vmul.f32 %v3460_v28, %v3858_v40  ;;  %v329_v59 = vmul.f32 %v3460_v28, %v2780_v63 }
 0x12b   :  { %v727_v5 = vrot.slane %v726_v11, 4  ;;  %v756_v13 = vmax.f32 %v754_v46, %v755_v14  ;;  %v487_v54 = vmul.f32 %v3464_v2, %v2812_v26  ;;  %v519_v26 = vmul.f32 %v3464_v2, %v2834_v32 }
 0x12c   :  { %v970_v33 = vadd.f32 %v969_v18, %v968_v21  ;;  %v983_v10 = vrot.slane %v982_v20, 4  ;;  %v345_v21 = vadd.f32 %v297_v61, %v155_v50 }
 0x12d   :  { %v728_v3 = vmax.f32 %v726_v11, %v727_v5  ;;  %v772_v0 = vsub.f32 %v3391_v9, %v756_v13  ;;  %v788_v29 = vsub.f32 %v3394_v45, %v756_v13  ;;  %v804_v27 = vsub.f32 %v3397_v39, %v756_v13 }
 0x12e   :  { %v971_v38 = vrot.slane %v970_v33, 1  ;;  %v984_v41 = vadd.f32 %v983_v10, %v982_v20  ;;  %v503_v11 = vmul.f32 %v3464_v2, %v2810_v55  ;;  %v361_v9 = vadd.f32 %v313_v19, %v171_v6 }
 0x12f   :  { %v729_v4 = vrot.slane %v728_v3, 2  ;;  %v835_v40 = vmul.f32 1.442695, %v772_v0  ;;  %v867_v1 = vmul.f32 1.442695, %v788_v29  ;;  %v377_v45 = vadd.f32 %v329_v59, %v187_v16 }
 0x130   :  { %v972_v46 = vadd.f32 %v971_v38, %v970_v33  ;;  %v985_v63 = vrot.slane %v984_v41, 2  ;;  %v899_v18 = vmul.f32 1.442695, %v804_v27  ;;  %v535_v5 = vadd.f32 %v487_v54, %v345_v21 }
 0x131   :  { %v730_v14 = vmax.f32 %v728_v3, %v729_v4  ;;  %v551_v33 = vadd.f32 %v503_v11, %v361_v9  ;;  %v567_v13 = vadd.f32 %v519_v26, %v377_v45 }
 0x132   :  { %2491 = vrcp.f32 %v972_v46  ;;  %v3486_v39 = vpop.eup %2483  ;;  %v986_v20 = vadd.f32 %v985_v63, %v984_v41  ;;  %v3497_v19 = vadd.f32 %v2836_v52, %v535_v5 }
 0x133   :  { %2493 = vpow2.f32 %v835_v40  ;;  %v731_v50 = vrot.slane %v730_v14, 1  ;;  %v3488_v61 = vpop.eup %2485  ;;  %v1088_v55 = vmul.f32 %v3486_v39, %v3361_v24  ;;  %v3500_v3 = vadd.f32 %v2864_v8, %v551_v33 }
 0x134   :  { %2495 = vpow2.f32 %v867_v1  ;;  %v3492_v10 = vpop.eup %2487  ;;  %v987_v32 = vrot.slane %v986_v20, 1  ;;  %v3503_v24 = vadd.f32 %v2893_v15, %v567_v13 }
 0x135   :  { %2497 = vpow2.f32 %v899_v18  ;;  %v732_v6 = vmax.f32 %v730_v14, %v731_v50  ;;  %1513 = vmatprep.subr.mxu1 %v1088_v55  ;;  %v1005_v16 = vadd.f32 %v3492_v10, %v3488_v61  ;;  %v3505_v59 = vpop.eup %2489  ;;  %v741_v52 = vmax.f32 %v3497_v19, %v3500_v3 }
 0x136   :  { %v988_v54 = vadd.f32 %v987_v32, %v986_v20  ;;  %v1070_v14 = vmul.f32 %v3413_v25, %v3263_v48 }
 0x137   :  { %v769_v38 = vsub.f32 %v3437_v30, %v732_v6  ;;  %v785_v0 = vsub.f32 %v3440_v36, %v732_v6  ;;  %v801_v29 = vsub.f32 %v3443_v44, %v732_v6  ;;  %v1006_v27 = vadd.f32 %v3505_v59, %v1005_v16 }
 0x138   :  { %2499 = vrcp.f32 %v988_v54  ;;  %v742_v21 = vmax.f32 %v741_v52, %v3503_v24 }
 0x139   :  { %v829_v8 = vmul.f32 1.442695, %v769_v38  ;;  %v861_v41 = vmul.f32 1.442695, %v785_v0  ;;  %v1007_v4 = vrot.slane %v1006_v27, 4 }
 0x13a   :  { %v893_v15 = vmul.f32 1.442695, %v801_v29  ;;  %v743_v30 = vrot.slane %v742_v21, 4 }
 0x13b   :  { %2501 = vpow2.f32 %v829_v8  ;;  %v1008_v46 = vadd.f32 %v1007_v4, %v1006_v27  ;;  %v1052_v27 = vmul.f32 %v3486_v39, %v3346_v22 }
 0x13c   :  { %2503 = vpow2.f32 %v861_v41  ;;  %v744_v36 = vmax.f32 %v742_v21, %v743_v30 }
 0x13d   :  { %v1009_v40 = vrot.slane %v1008_v46, 2  ;;  %2505 = vpow2.f32 %v893_v15 }
 0x13e   :  { %v745_v26 = vrot.slane %v744_v36, 2 }
 0x13f   :  { %v2492_v44 = vpop.eup %2491  ;;  %v1010_v63 = vadd.f32 %v1009_v40, %v1008_v46 }
 0x140   :  { %v3514_v1 = vpop.eup %2493  ;;  %v1085_v11 = vmul.f32 %v2492_v44, %v3425_v49  ;;  %v1069_v45 = vmul.f32 %v2492_v44, %v3421_v37  ;;  %v1048_v49 = vmul.f32 %v3413_v25, %v3256_v57  ;;  %v746_v50 = vmax.f32 %v744_v36, %v745_v26 }
 0x141   :  { %v3517_v18 = vpop.eup %2495  ;;  %v1011_v5 = vrot.slane %v1010_v63, 1  ;;  %v1046_v55 = vmul.f32 %v2492_v44, %v3417_v31  ;;  %v1072_v25 = vmul.f32 %v3486_v39, %v3353_v51 }
 0x142   :  { %v3521_v9 = vpop.eup %2497  ;;  %1437 = vmatpush1.msra.mxu0 %v1085_v11  ;;  %v1021_v20 = vadd.f32 %v3517_v18, %v3514_v1  ;;  %v747_v13 = vrot.slane %v746_v50, 1 }
 0x143   :  { %1438 = vmatprep.subr.mxu0 %v1070_v14  ;;  %v1012_v33 = vadd.f32 %v1011_v5, %v1010_v63 }
 0x144   :  { %1439 = vmatpush1.msra.mxu0 %v1069_v45  ;;  %v1022_v48 = vadd.f32 %v3521_v9, %v1021_v20  ;;  %v748_v16 = vmax.f32 %v746_v50, %v747_v13 }
 0x145   :  { %1440 = vmatprep.subr.mxu0 %v1048_v49  ;;  %v2500_v32 = vpop.eup %2499  ;;  %2507 = vrcp.f32 %v1012_v33 }
 0x146   :  { %1441 = vmatpush1.msra.mxu0 %v1046_v55  ;;  %v1023_v37 = vrot.slane %v1022_v48, 4  ;;  %v1087_v6 = vmul.f32 %v2500_v32, %v3451_v35  ;;  %v1071_v38 = vmul.f32 %v2500_v32, %v3449_v23  ;;  %v771_v0 = vsub.f32 %v3497_v19, %v748_v16 }
 0x147   :  { %2369 = vmatmul.mubr.msk.f32.vlgmr.msra.gmra.mxu0 %vm1095_vm0, %v3173_v7  ;;  %v787_v35 = vsub.f32 %v3500_v3, %v748_v16  ;;  %v803_v29 = vsub.f32 %v3503_v24, %v748_v16  ;;  %v1050_v41 = vmul.f32 %v2500_v32, %v3445_v62 }
 0x148   :  { %v3533_v57 = vpop.eup %2501  ;;  %v1024_v31 = vadd.f32 %v1023_v37, %v1022_v48  ;;  %1480 = vmatprep.mubr.f32.mxu0 %v3871_v60  ;;  %1514 = vmatpush1.msra.mxu1 %v1087_v6  ;;  %v833_v4 = vmul.f32 1.442695, %v771_v0  ;;  %v3885_v0 = vld [vmem:[#allocation16_spill] sm:$0xff] }
 0x149   :  { %v2504_v54 = vpop.eup %2503  ;;  %1515 = vmatprep.subr.mxu1 %v1072_v25  ;;  %v865_v15 = vmul.f32 1.442695, %v787_v35  ;;  %v897_v3 = vmul.f32 1.442695, %v803_v29 }
 0x14a   :  { %v1025_v52 = vrot.slane %v1024_v31, 2  ;;  %v997_v51 = vadd.f32 %v2504_v54, %v3533_v57  ;;  %v2506_v8 = vpop.eup %2505  ;;  %1516 = vmatpush1.msra.mxu1 %v1071_v38  ;;  %2509 = vpow2.f32 %v833_v4 }
 0x14b   :  { %2370 = vmatmul.mubr.msk.f32.gmra.mxu0 %vm1095_vm0, %v3205_v42  ;;  %1517 = vmatprep.subr.mxu1 %v1052_v27  ;;  %2511 = vpow2.f32 %v865_v15  ;;  %v3888_v15 = vld [vmem:[#allocation15_spill] sm:$0xff] }
 0x14c   :  { %v1026_v23 = vadd.f32 %v1025_v52, %v1024_v31  ;;  %v998_v19 = vadd.f32 %v2506_v8, %v997_v51  ;;  %1628 = vmatprep.mubr.f32.mxu0 %v3871_v60  ;;  %1518 = vmatpush1.msra.mxu1 %v1050_v41  ;;  %2513 = vpow2.f32 %v897_v3  ;;  %v3886_v52 = vld [vmem:[#allocation18_spill] sm:$0xff]  ;;  %v3887_v51 = vld [vmem:[#allocation12_spill] sm:$0xff] }
 0x14d   :  { %2371 = vmatmul.mubr.msk.f32.vlgmr.msra.gmra.mxu1 %vm1095_vm0, %v3173_v7 }
 0x14e   :  { %v1027_v22 = vrot.slane %v1026_v23, 1  ;;  %v999_v39 = vrot.slane %v998_v19, 4  ;;  %1557 = vmatprep.mubr.f32.mxu1 %v3871_v60 }
 0x150   :  { %v1028_v62 = vadd.f32 %v1027_v22, %v1026_v23  ;;  %v1000_v24 = vadd.f32 %v999_v39, %v998_v19  ;;  %v3890_v22 = vld [vmem:[#allocation17_spill] sm:$0xff] }
 0x151   :  { %2372 = vmatmul.mubr.msk.f32.gmra.mxu1 %vm1095_vm0, %v3205_v42  ;;  %v3891_v39 = vld [vmem:[#allocation29_spill] sm:$0xff] }
 0x152   :  { %2515 = vrcp.f32 %v1028_v62  ;;  %v1001_v21 = vrot.slane %v1000_v24, 2  ;;  %v2508_v46 = vpop.eup %2507  ;;  %1705 = vmatprep.mubr.f32.mxu1 %v3871_v60 }
 0x153   :  { %v1090_v30 = vmul.f32 %v2508_v46, %v3505_v59  ;;  %v1074_v32 = vmul.f32 %v2508_v46, %v3492_v10  ;;  %v1056_v16 = vmul.f32 %v2508_v46, %v3488_v61 }
 0x154   :  { %v1002_v40 = vadd.f32 %v1001_v21, %v1000_v24 }
 0x155   :  { %1590 = vmatprep.subr.mxu0 %v1090_v30  ;;  %v3892_v30 = vld [vmem:[#allocation14_spill] sm:$0xff] }
 0x156   :  { %v1003_v36 = vrot.slane %v1002_v40, 1 }
 0x157   :  { %v2510_v11 = vpop.eup %2509 }
 0x158   :  { %v1004_v44 = vadd.f32 %v1003_v36, %v1002_v40  ;;  %v2512_v63 = vpop.eup %2511 }
 0x159   :  { %v1013_v14 = vadd.f32 %v2512_v63, %v2510_v11  ;;  %v2514_v26 = vpop.eup %2513 }
 0x15a   :  { %2517 = vrcp.f32 %v1004_v44 }
 0x15b   :  { %v1014_v45 = vadd.f32 %v2514_v26, %v1013_v14  ;;  %v3894_v14 = vld [vmem:[#allocation10_spill] sm:$0xff] }
 0x15d   :  { %v1015_v49 = vrot.slane %v1014_v45, 4 }
 0x15f   :  { %v2516_v5 = vpop.eup %2515  ;;  %v1016_v50 = vadd.f32 %v1015_v49, %v1014_v45 }
 0x160   :  { %v1092_v20 = vmul.f32 %v2516_v5, %v3521_v9  ;;  %v1076_v31 = vmul.f32 %v2516_v5, %v3517_v18 }
 0x161   :  { %v1017_v55 = vrot.slane %v1016_v50, 2 }
 0x162   :  { %1667 = vmatprep.subr.mxu1 %v1092_v20 }
 0x163   :  { %v1018_v33 = vadd.f32 %v1017_v55, %v1016_v50 }
 0x165   :  { %v1019_v13 = vrot.slane %v1018_v33, 1 }
 0x167   :  { %v2518_v48 = vpop.eup %2517  ;;  %v1020_v37 = vadd.f32 %v1019_v13, %v1018_v33 }
 0x168   :  { %v1089_v59 = vmul.f32 %v2518_v48, %v2506_v8  ;;  %v1073_v6 = vmul.f32 %v2518_v48, %v2504_v54  ;;  %v1054_v9 = vmul.f32 %v2518_v48, %v3533_v57  ;;  %v1060_v54 = vmul.f32 %v2516_v5, %v3514_v1 }
 0x169   :  { %2519 = vrcp.f32 %v1020_v37  ;;  %v3895_v37 = vld [vmem:[#allocation13_spill] sm:$0xff] }
 0x16a   :  { %1591 = vmatpush1.msra.mxu0 %v1089_v59 }
 0x16b   :  { %1592 = vmatprep.subr.mxu0 %v1074_v32 }
 0x16c   :  { %1593 = vmatpush1.msra.mxu0 %v1073_v6 }
 0x16d   :  { %1594 = vmatprep.subr.mxu0 %v1056_v16  ;;  %v3896_v16 = vld [vmem:[#allocation25_spill] sm:$0xff] }
 0x16e   :  { %1595 = vmatpush1.msra.mxu0 %v1054_v9 }
 0x16f   :  { %2373 = vmatmul.mubr.msk.f32.vlgmr.msra.gmra.mxu0 %vm1095_vm0, %v3173_v7 }
 0x170   :  { %1634 = vmatprep.mubr.f32.mxu0 %v3871_v60 }
 0x173   :  { %2374 = vmatmul.mubr.msk.f32.gmra.mxu0 %vm1095_vm0, %v3205_v42 }
 0x176   :  { %v2520_v10 = vpop.eup %2519 }
 0x177   :  { %v1091_v25 = vmul.f32 %v2520_v10, %v2514_v26  ;;  %v1075_v61 = vmul.f32 %v2520_v10, %v2512_v63  ;;  %v1058_v57 = vmul.f32 %v2520_v10, %v2510_v11  ;;  %v3893_v11 = vld [vmem:[#allocation20_spill] sm:$0xff] }
 0x179   :  { %1668 = vmatpush1.msra.mxu1 %v1091_v25 }
 0x17a   :  { %1669 = vmatprep.subr.mxu1 %v1076_v31 }
 0x17b   :  { %1670 = vmatpush1.msra.mxu1 %v1075_v61 }
 0x17c   :  { %1671 = vmatprep.subr.mxu1 %v1060_v54 }
 0x17d   :  { %1672 = vmatpush1.msra.mxu1 %v1058_v57 }
 0x17e   :  { %2375 = vmatmul.mubr.msk.f32.vlgmr.msra.gmra.mxu1 %vm1095_vm0, %v3173_v7  ;;  %v3889_v7 = vld [vmem:[#allocation26_spill] sm:$0xff] }
 0x17f   :  { %1711 = vmatprep.mubr.f32.mxu1 %v3871_v60 }
 0x182   :  { %2376 = vmatmul.mubr.msk.f32.gmra.mxu1 %vm1095_vm0, %v3205_v42 }
 0x1b3   :  { %v1168_v38 = vpop.f32.mrf.mxu0 }
 0x1b4   :  { %v1734_v18 = vmul.f32 %v1168_v38, %v3885_v0  ;;  %v1718_v23 = vmul.f32 %v1168_v38, %v3888_v15  ;;  %v1814_v19 = vmul.f32 %v1168_v38, %v3889_v7 }
 0x1b5   :  { %v1170_v35 = vpop.f32.mrf.mxu0 }
 0x1b6   :  { %v1245_v29 = vpop.f32.mrf.mxu1  ;;  %v1766_v27 = vrot.slane %v1734_v18, 1  ;;  %v1735_v8 = vmul.f32 %v1170_v35, %v3887_v51  ;;  %v1846_v36 = vrot.slane %v1814_v19, 2  ;;  %v1815_v63 = vmul.f32 %v1170_v35, %v3893_v11 }
 0x1b7   :  { %v1736_v1 = vmul.f32 %v1245_v29, %v3886_v52  ;;  %v1720_v42 = vmul.f32 %v1245_v29, %v3890_v22  ;;  %v1816_v62 = vmul.f32 %v1245_v29, %v3891_v39  ;;  %v1719_v26 = vmul.f32 %v1170_v35, %v3894_v14 }
 0x1b8   :  { %v1247_v41 = vpop.f32.mrf.mxu1  ;;  %v1174_v4 = vpop.f32.mrf.mxu0  ;;  %v1798_v3 = vadd.f32 %v1766_v27, %v1718_v23  ;;  %v1767_v46 = vrot.slane %v1735_v8, 1  ;;  %v1847_v59 = vrot.slane %v1815_v63, 2 }
 0x1b9   :  { %v1768_v60 = vrot.slane %v1736_v1, 1  ;;  %v2006_v24 = vmul.f32 %v1174_v4, %v3889_v7  ;;  %v1737_v40 = vmul.f32 %v1247_v41, %v3892_v30  ;;  %v1848_v20 = vrot.slane %v1816_v62, 2 }
 0x1ba   :  { %v1251_v21 = vpop.f32.mrf.mxu1  ;;  %v1878_v5 = vadd.f32 %v1846_v36, %v1798_v3  ;;  %v1176_v50 = vpop.f32.mrf.mxu0  ;;  %v1799_v55 = vadd.f32 %v1767_v46, %v1719_v26  ;;  %v1958_v13 = vrot.slane %v1174_v4, 7  ;;  %v1721_v6 = vmul.f32 %v1247_v41, %v3895_v37 }
 0x1bb   :  { %v1800_v44 = vadd.f32 %v1768_v60, %v1720_v42  ;;  %v2008_v45 = vmul.f32 %v1251_v21, %v3891_v39  ;;  %v2038_v49 = vrot.slane %v2006_v24, 2  ;;  %v1769_v33 = vrot.slane %v1737_v40, 1 }
 0x1bc   :  { %v3584_v32 = vpop.f32.mrf.mxu1  ;;  %v1817_v9 = vmul.f32 %v1247_v41, %v3896_v16  ;;  %v2007_v25 = vmul.f32 %v1176_v50, %v3893_v11  ;;  %v1990_v31 = vadd.f32 %v1958_v13, %v1878_v5  ;;  %v1960_v54 = vrot.slane %v1251_v21, 7 }
 0x1bd   :  { %v1880_v48 = vadd.f32 %v1848_v20, %v1800_v44  ;;  %v2040_v10 = vrot.slane %v2008_v45, 2  ;;  %v2070_v61 = vadd.f32 %v2038_v49, %v1798_v3  ;;  %v1879_v57 = vadd.f32 %v1847_v59, %v1799_v55 }
 0x1be   :  { %v1801_v38 = vadd.f32 %v1769_v33, %v1721_v6  ;;  %v2039_v0 = vrot.slane %v2007_v25, 2  ;;  %v2009_v18 = vmul.f32 %v3584_v32, %v3896_v16  ;;  %v2086_v35 = vrot.slane %v1174_v4, 5  ;;  %v3899_v16 = vld [vmem:[#allocation22_spill] sm:$0xff] }
 0x1bf   :  { %v1992_v29 = vadd.f32 %v1960_v54, %v1880_v48  ;;  %v1849_v27 = vrot.slane %v1817_v9, 2  ;;  %v2072_v52 = vadd.f32 %v2040_v10, %v1800_v44  ;;  %v1959_v1 = vrot.slane %v1176_v50, 7 }
 0x1c0   :  { %v2041_v51 = vrot.slane %v2009_v18, 2  ;;  %v1910_v8 = vrot.slane %v1174_v4, 1  ;;  %v2118_v41 = vadd.f32 %v2086_v35, %v2070_v61  ;;  %v2150_v15 = vrot.slane %v1990_v31, 2  ;;  %v3900_v31 = vld [vmem:[#allocation30_spill] sm:$0xff] }
 0x1c1   :  { %v1881_v23 = vadd.f32 %v1849_v27, %v1801_v38  ;;  %v2088_v7 = vrot.slane %v1251_v21, 5  ;;  %v1991_v19 = vadd.f32 %v1959_v1, %v1879_v57  ;;  %v2071_v60 = vadd.f32 %v2039_v0, %v1799_v55 }
 0x1c2   :  { %v1942_v3 = vadd.f32 %v1910_v8, %v1878_v5  ;;  %v1912_v22 = vrot.slane %v1251_v21, 1  ;;  %v2152_v42 = vrot.slane %v1992_v29, 2  ;;  %v2087_v62 = vrot.slane %v1176_v50, 5  ;;  %v3897_v5 = vld [vmem:[#allocation32_spill] sm:$0xff] }
 0x1c3   :  { %v2120_v39 = vadd.f32 %v2088_v7, %v2072_v52  ;;  %v1961_v24 = vrot.slane %v3584_v32, 7  ;;  %v2073_v46 = vadd.f32 %v2041_v51, %v1801_v38  ;;  %v2198_v30 = vrot.slane %v2118_v41, 4 }
 0x1c4   :  { %v2231_v40 = vsel %vm2230_vm1, %v1942_v3, %v2150_v15  ;;  %v1944_v4 = vadd.f32 %v1912_v22, %v1880_v48  ;;  %v1911_v36 = vrot.slane %v1176_v50, 1  ;;  %v2119_v44 = vadd.f32 %v2087_v62, %v2071_v60  ;;  %v3898_v48 = vld [vmem:[#allocation28_spill] sm:$0xff] }
 0x1c5   :  { %v2151_v11 = vrot.slane %v1991_v19, 2  ;;  %v1993_v63 = vadd.f32 %v1961_v24, %v1881_v23  ;;  %v2089_v14 = vrot.slane %v3584_v32, 5  ;;  %v2200_v49 = vrot.slane %v2120_v39, 4 }
 0x1c6   :  { %v1943_v45 = vadd.f32 %v1911_v36, %v1879_v57  ;;  %v2233_v55 = vsel %vm2230_vm1, %v1944_v4, %v2152_v42  ;;  %v1913_v33 = vrot.slane %v3584_v32, 1  ;;  %v3599_v50 = vsel %vm2247_vm2, %v2231_v40, %v2198_v30  ;;  %v3901_v32 = vld [vmem:[#allocation21_spill] sm:$0xff]  ;;  %v3615_v40 = vpop.permute.xlu0 %2267 }
 0x1c7   :  { %v2121_v59 = vadd.f32 %v2089_v14, %v2073_v46  ;;  %v2199_v10 = vrot.slane %v2119_v44, 4  ;;  %v2153_v25 = vrot.slane %v1993_v63, 2  ;;  %v3607_v35 = vsel %vm2247_vm2, %v2233_v55, %v2200_v49 }
 0x1c8   :  { %v1945_v29 = vadd.f32 %v1913_v33, %v1881_v23  ;;  %v2270_v49 = vsub.f32 %v3599_v50, %v3615_v40  ;;  %v3902_v33 = vld [vmem:[#allocation33_spill] sm:$0xff] }
 0x1c9   :  { %v2201_v27 = vrot.slane %v2121_v59, 4 }
 0x1ca   :  { %v2234_v19 = vsel %vm2230_vm1, %v1945_v29, %v2153_v25 }
 0x1cb   :  { %v2251_v4 = vsel %vm2247_vm2, %v2234_v19, %v2201_v27 }
 0x1cc   :  { %v1322_v26 = vpop.f32.mrf.mxu0  ;;  %v2273_v50 = vsub.f32 %v2251_v4, %v3615_v40 }
 0x1cd   :  { %v1738_v21 = vmul.f32 %v1322_v26, %v2672_v43  ;;  %v1818_v20 = vmul.f32 %v1322_v26, %v3897_v5  ;;  %v1722_v37 = vmul.f32 %v1322_v26, %v3898_v48  ;;  %v2232_v43 = vsel %vm2230_vm1, %v1943_v45, %v2151_v11 }
 0x1ce   :  { %v1324_v13 = vpop.f32.mrf.mxu0  ;;  %v3611_v7 = vsel %vm2247_vm2, %v2232_v43, %v2199_v10 }
 0x1cf   :  { %v1770_v6 = vrot.slane %v1738_v21, 1  ;;  %v1739_v9 = vmul.f32 %v1324_v13, %v3899_v16  ;;  %v1819_v61 = vmul.f32 %v1324_v13, %v3900_v31  ;;  %v1850_v38 = vrot.slane %v1818_v20, 2 }
 0x1d0   :  { %v1328_v54 = vpop.f32.mrf.mxu0  ;;  %v1723_v0 = vmul.f32 %v1324_v13, %v3901_v32  ;;  %v2271_v55 = vsub.f32 %v3611_v7, %v3615_v40  ;;  %v3903_v13 = vld [vmem:[#allocation34_spill] sm:$0xff]  ;;  %v3906_v32 = vld [vmem:[#allocation27_spill] sm:$0xff] }
 0x1d1   :  { %v1802_v57 = vadd.f32 %v1770_v6, %v1722_v37  ;;  %v1771_v18 = vrot.slane %v1739_v9, 1  ;;  %v2010_v52 = vmul.f32 %v1328_v54, %v3897_v5  ;;  %v1851_v41 = vrot.slane %v1819_v61, 2  ;;  %v3904_v37 = vld [vmem:[#allocation36_spill] sm:$0xff]  ;;  %v3626_v9 = vpop.permute.xlu1 %2287 }
 0x1d2   :  { %v1330_v1 = vpop.f32.mrf.mxu0  ;;  %v1962_v15 = vrot.slane %v1328_v54, 7  ;;  %v1914_v42 = vrot.slane %v1328_v54, 1  ;;  %v2090_v24 = vrot.slane %v1328_v54, 5 }
 0x1d3   :  { %v1882_v51 = vadd.f32 %v1850_v38, %v1802_v57  ;;  %v1803_v8 = vadd.f32 %v1771_v18, %v1723_v0  ;;  %v2042_v60 = vrot.slane %v2010_v52, 2  ;;  %v2011_v3 = vmul.f32 %v1330_v1, %v3900_v31  ;;  %v3907_v18 = vld [vmem:[#allocation31_spill] sm:$0xff] }
 0x1d4   :  { %v1963_v23 = vrot.slane %v1330_v1, 7  ;;  %v1915_v46 = vrot.slane %v1330_v1, 1  ;;  %v2091_v45 = vrot.slane %v1330_v1, 5  ;;  %v2272_v31 = vsub.f32 %v3607_v35, %v3615_v40 }
 0x1d5   :  { %v1883_v22 = vadd.f32 %v1851_v41, %v1803_v8  ;;  %v1994_v39 = vadd.f32 %v1962_v15, %v1882_v51  ;;  %v2074_v62 = vadd.f32 %v2042_v60, %v1802_v57  ;;  %v2043_v30 = vrot.slane %v2011_v3, 2  ;;  %v3905_v57 = vld [vmem:[#allocation23_spill] sm:$0xff] }
 0x1d6   :  { %v1946_v36 = vadd.f32 %v1914_v42, %v1882_v51  ;;  %v2290_v51 = vmul.f32 %v3626_v9, %v2270_v49 }
 0x1d7   :  { %v2154_v44 = vrot.slane %v1994_v39, 2  ;;  %v1995_v11 = vadd.f32 %v1963_v23, %v1883_v22  ;;  %v2122_v63 = vadd.f32 %v2090_v24, %v2074_v62  ;;  %v1947_v14 = vadd.f32 %v1915_v46, %v1883_v22 }
 0x1d8   :  { %v2075_v26 = vadd.f32 %v2043_v30, %v1803_v8 }
 0x1d9   :  { %v1399_v21 = vpop.f32.mrf.mxu1  ;;  %v2235_v5 = vsel %vm2230_vm1, %v1946_v36, %v2154_v44  ;;  %v2155_v20 = vrot.slane %v1995_v11, 2  ;;  %v2202_v16 = vrot.slane %v2122_v63, 4 }
 0x1da   :  { %v1724_v59 = vmul.f32 %v1399_v21, %v3902_v33  ;;  %v1740_v48 = vmul.f32 %v1399_v21, %v3903_v13  ;;  %v1820_v6 = vmul.f32 %v1399_v21, %v3904_v37  ;;  %v2123_v43 = vadd.f32 %v2091_v45, %v2075_v26 }
 0x1db   :  { %v1401_v10 = vpop.f32.mrf.mxu1  ;;  %v2236_v25 = vsel %vm2230_vm1, %v1947_v14, %v2155_v20  ;;  %v2252_v27 = vsel %vm2247_vm2, %v2235_v5, %v2202_v16  ;;  %v2291_v45 = vmul.f32 %v3626_v9, %v2271_v55  ;;  %v2292_v21 = vmul.f32 %v3626_v9, %v2272_v31 }
 0x1dc   :  { %v1772_v61 = vrot.slane %v1740_v48, 1  ;;  %v1852_v54 = vrot.slane %v1820_v6, 2  ;;  %v1725_v38 = vmul.f32 %v1401_v10, %v3905_v57  ;;  %v1741_v0 = vmul.f32 %v1401_v10, %v3906_v32 }
 0x1dd   :  { %v1821_v29 = vmul.f32 %v1401_v10, %v3907_v18  ;;  %v1405_v52 = vpop.f32.mrf.mxu1  ;;  %v2203_v1 = vrot.slane %v2123_v43, 4  ;;  %v2274_v4 = vsub.f32 %v2252_v27, %v3615_v40  ;;  %v2293_v33 = vmul.f32 %v3626_v9, %v2273_v50 }
 0x1de   :  { %v1804_v8 = vadd.f32 %v1772_v61, %v1724_v59  ;;  %v1773_v41 = vrot.slane %v1741_v0, 1  ;;  %v1916_v15 = vrot.slane %v1405_v52, 1  ;;  %v1964_v35 = vrot.slane %v1405_v52, 7 }
 0x1df   :  { %v1853_v7 = vrot.slane %v1821_v29, 2  ;;  %v2012_v19 = vmul.f32 %v1405_v52, %v3904_v37  ;;  %v2092_v60 = vrot.slane %v1405_v52, 5  ;;  %v2253_v3 = vsel %vm2247_vm2, %v2236_v25, %v2203_v1  ;;  %v1407_v22 = vpop.f32.mrf.mxu1 }
 0x1e0   :  { %v1884_v42 = vadd.f32 %v1852_v54, %v1804_v8  ;;  %v1805_v39 = vadd.f32 %v1773_v41, %v1725_v38  ;;  %v1917_v23 = vrot.slane %v1407_v22, 1  ;;  %v1965_v62 = vrot.slane %v1407_v22, 7 }
 0x1e1   :  { %v2044_v24 = vrot.slane %v2012_v19, 2  ;;  %v2013_v46 = vmul.f32 %v1407_v22, %v3907_v18  ;;  %v2093_v30 = vrot.slane %v1407_v22, 5  ;;  %v2275_v63 = vsub.f32 %v2253_v3, %v3615_v40  ;;  %v3910_v19 = vld [vmem:[#allocation38_spill] sm:$0xff] }
 0x1e2   :  { %v1885_v36 = vadd.f32 %v1853_v7, %v1805_v39  ;;  %v1948_v44 = vadd.f32 %v1916_v15, %v1884_v42  ;;  %v1996_v11 = vadd.f32 %v1964_v35, %v1884_v42  ;;  %v2294_v48 = vmul.f32 %v3626_v9, %v2274_v4  ;;  %v3909_v35 = vld [vmem:[#allocation37_spill] sm:$0xff] }
 0x1e3   :  { %v2076_v14 = vadd.f32 %v2044_v24, %v1804_v8  ;;  %v2045_v26 = vrot.slane %v2013_v46, 2  ;;  %v2295_v37 = vmul.f32 %v3626_v9, %v2275_v63  ;;  %v2322_v10 = vcombine.low %v2290_v51, %v2291_v45  ;;  %v3908_v8 = vld [vmem:[#allocation42_spill] sm:$0xff]  ;;  %v3913_v63 = vld [vmem:[#allocation49_spill] sm:$0xff] }
 0x1e4   :  { %v2156_v5 = vrot.slane %v1996_v11, 2  ;;  %v1949_v20 = vadd.f32 %v1917_v23, %v1885_v36  ;;  %v1997_v49 = vadd.f32 %v1965_v62, %v1885_v36  ;;  %v2323_v43 = vcombine.low %v2292_v21, %v2293_v33 }
 0x1e5   :  { %v2124_v59 = vadd.f32 %v2092_v60, %v2076_v14  ;;  %v2077_v13 = vadd.f32 %v2045_v26, %v1805_v39  ;;  %v2324_v61 = vcombine.low %v2294_v48, %v2295_v37  ;;  %2338 = vst [vmem:[#allocation5] sm:$0x77] %v2322_v10  ;;  %v3911_v39 = vld [vmem:[#allocation35_spill] sm:$0xff]  ;;  %v3915_v37 = vld [vmem:[#allocation40_spill] sm:$0xff]  ;;  %v3916_v10 = vld [vmem:[#allocation41_spill] sm:$0xff] }
 0x1e6   :  { %v2237_v6 = vsel %vm2230_vm1, %v1948_v44, %v2156_v5  ;;  %v2157_v16 = vrot.slane %v1997_v49, 2  ;;  %2339 = vst [vmem:[#allocation5 + $0x8] sm:$0x77] %v2323_v43  ;;  %v3912_v44 = vld [vmem:[#allocation46_spill] sm:$0xff] }
 0x1e7   :  { %v2204_v25 = vrot.slane %v2124_v59, 4  ;;  %v2125_v55 = vadd.f32 %v2093_v30, %v2077_v13  ;;  %2340 = vst [vmem:[#allocation5 + $0x10] sm:$0x77] %v2324_v61  ;;  %v3914_v59 = vld [vmem:[#allocation45_spill] sm:$0xff] }
 0x1e8   :  { %v2238_v31 = vsel %vm2230_vm1, %v1949_v20, %v2157_v16 }
 0x1e9   :  { %v2254_v50 = vsel %vm2247_vm2, %v2237_v6, %v2204_v25  ;;  %v2205_v54 = vrot.slane %v2125_v55, 4 }
 0x1ea   :  { %v2276_v57 = vsub.f32 %v2254_v50, %v3615_v40  ;;  %v3917_v50 = vld [vmem:[#allocation39_spill] sm:$0xff] }
 0x1eb   :  { %v2255_v38 = vsel %vm2247_vm2, %v2238_v31, %v2205_v54 }
 0x1ec   :  { %v2277_v32 = vsub.f32 %v2255_v38, %v3615_v40  ;;  %v2296_v0 = vmul.f32 %v3626_v9, %v2276_v57 }
 0x1ee   :  { %v2297_v18 = vmul.f32 %v3626_v9, %v2277_v32 }
 0x1f0   :  { %v2325_v29 = vcombine.low %v2296_v0, %v2297_v18 }
 0x1f2   :  { %2341 = vst [vmem:[#allocation5 + $0x18] sm:$0x77] %v2325_v29 }
 0x207   :  { %v1476_v27 = vpop.f32.mrf.mxu0 }
 0x208   :  { %v1742_v52 = vmul.f32 %v1476_v27, %v3869_v53  ;;  %v1822_v1 = vmul.f32 %v1476_v27, %v3870_v34  ;;  %v1726_v41 = vmul.f32 %v1476_v27, %v3908_v8 }
 0x209   :  { %v1478_v51 = vpop.f32.mrf.mxu0 }
 0x20a   :  { %v1774_v15 = vrot.slane %v1742_v52, 1  ;;  %v1743_v7 = vmul.f32 %v1478_v51, %v3909_v35  ;;  %v1823_v60 = vmul.f32 %v1478_v51, %v3910_v19  ;;  %v1854_v42 = vrot.slane %v1822_v1, 2 }
 0x20b   :  { %v1482_v3 = vpop.f32.mrf.mxu0  ;;  %v1727_v23 = vmul.f32 %v1478_v51, %v3911_v39 }
 0x20c   :  { %v1806_v22 = vadd.f32 %v1774_v15, %v1726_v41  ;;  %v1775_v62 = vrot.slane %v1743_v7, 1  ;;  %v2014_v24 = vmul.f32 %v1482_v3, %v3870_v34  ;;  %v1966_v36 = vrot.slane %v1482_v3, 7 }
 0x20d   :  { %v1484_v46 = vpop.f32.mrf.mxu0  ;;  %v1553_v30 = vpop.f32.mrf.mxu1  ;;  %v1855_v26 = vrot.slane %v1823_v60, 2  ;;  %v1918_v5 = vrot.slane %v1482_v3, 1  ;;  %v2094_v49 = vrot.slane %v1482_v3, 5 }
 0x20e   :  { %v1886_v53 = vadd.f32 %v1854_v42, %v1806_v22  ;;  %v1807_v4 = vadd.f32 %v1775_v62, %v1727_v23  ;;  %v1744_v11 = vmul.f32 %v1553_v30, %v3912_v44  ;;  %v1824_v14 = vmul.f32 %v1553_v30, %v3913_v63 }
 0x20f   :  { %v2046_v45 = vrot.slane %v2014_v24, 2  ;;  %v1555_v21 = vpop.f32.mrf.mxu1  ;;  %v1967_v33 = vrot.slane %v1484_v46, 7  ;;  %v1728_v13 = vmul.f32 %v1553_v30, %v3914_v59  ;;  %v2015_v61 = vmul.f32 %v1484_v46, %v3910_v19 }
 0x210   :  { %v1998_v20 = vadd.f32 %v1966_v36, %v1886_v53  ;;  %v1776_v48 = vrot.slane %v1744_v11, 1  ;;  %v1887_v34 = vadd.f32 %v1855_v26, %v1807_v4  ;;  %v1745_v6 = vmul.f32 %v1555_v21, %v3915_v37 }
 0x211   :  { %v1856_v16 = vrot.slane %v1824_v14, 2  ;;  %v1825_v43 = vmul.f32 %v1555_v21, %v3916_v10  ;;  %v2078_v25 = vadd.f32 %v2046_v45, %v1806_v22  ;;  %v1559_v55 = vpop.f32.mrf.mxu1  ;;  %v1729_v54 = vmul.f32 %v1555_v21, %v3917_v50 }
 0x212   :  { %v1808_v31 = vadd.f32 %v1776_v48, %v1728_v13  ;;  %v1777_v57 = vrot.slane %v1745_v6, 1  ;;  %v2158_v38 = vrot.slane %v1998_v20, 2  ;;  %v1950_v32 = vadd.f32 %v1918_v5, %v1886_v53 }
 0x213   :  { %v2126_v0 = vadd.f32 %v2094_v49, %v2078_v25  ;;  %v1968_v18 = vrot.slane %v1559_v55, 7  ;;  %v2016_v29 = vmul.f32 %v1559_v55, %v3913_v63  ;;  %v1857_v1 = vrot.slane %v1825_v43, 2  ;;  %v1561_v7 = vpop.f32.mrf.mxu1 }
 0x214   :  { %v1888_v27 = vadd.f32 %v1856_v16, %v1808_v31  ;;  %v1809_v52 = vadd.f32 %v1777_v57, %v1729_v54  ;;  %v1999_v51 = vadd.f32 %v1967_v33, %v1887_v34  ;;  %v1919_v15 = vrot.slane %v1484_v46, 1 }
 0x215   :  { %v2206_v8 = vrot.slane %v2126_v0, 4  ;;  %v2048_v41 = vrot.slane %v2016_v29, 2  ;;  %v2047_v35 = vrot.slane %v2015_v61, 2  ;;  %v2239_v60 = vsel %vm2230_vm1, %v1950_v32, %v2158_v38 }
 0x216   :  { %v1889_v19 = vadd.f32 %v1857_v1, %v1809_v52  ;;  %v2000_v3 = vadd.f32 %v1968_v18, %v1888_v27  ;;  %v2159_v22 = vrot.slane %v1999_v51, 2  ;;  %v2096_v39 = vrot.slane %v1559_v55, 5 }
 0x217   :  { %v2080_v42 = vadd.f32 %v2048_v41, %v1808_v31  ;;  %v2079_v23 = vadd.f32 %v2047_v35, %v1807_v4  ;;  %v2095_v62 = vrot.slane %v1484_v46, 5  ;;  %v1920_v24 = vrot.slane %v1559_v55, 1 }
 0x218   :  { %v2160_v53 = vrot.slane %v2000_v3, 2  ;;  %v1951_v30 = vadd.f32 %v1919_v15, %v1887_v34  ;;  %v1969_v36 = vrot.slane %v1561_v7, 7  ;;  %v2256_v44 = vsel %vm2247_vm2, %v2239_v60, %v2206_v8  ;;  %v3918_v8 = vld [vmem:[#allocation50_spill] sm:$0xff]  ;;  %v3920_v3 = vld [vmem:[#allocation47_spill] sm:$0xff] }
 0x219   :  { %v2128_v11 = vadd.f32 %v2096_v39, %v2080_v42  ;;  %v2127_v63 = vadd.f32 %v2095_v62, %v2079_v23  ;;  %v2017_v14 = vmul.f32 %v1561_v7, %v3916_v10  ;;  %v1952_v26 = vadd.f32 %v1920_v24, %v1888_v27  ;;  %v3919_v15 = vld [vmem:[#allocation54_spill] sm:$0xff] }
 0x21a   :  { %v2240_v45 = vsel %vm2230_vm1, %v1951_v30, %v2159_v22  ;;  %v2001_v21 = vadd.f32 %v1969_v36, %v1889_v19  ;;  %v2278_v4 = vsub.f32 %v2256_v44, %v3615_v40  ;;  %v1921_v33 = vrot.slane %v1561_v7, 1 }
 0x21b   :  { %v2208_v5 = vrot.slane %v2128_v11, 4  ;;  %v2207_v20 = vrot.slane %v2127_v63, 4  ;;  %v2049_v49 = vrot.slane %v2017_v14, 2  ;;  %v2241_v46 = vsel %vm2230_vm1, %v1952_v26, %v2160_v53 }
 0x21c   :  { %v2161_v59 = vrot.slane %v2001_v21, 2  ;;  %v2097_v34 = vrot.slane %v1561_v7, 5  ;;  %v1953_v6 = vadd.f32 %v1921_v33, %v1889_v19  ;;  %v2298_v43 = vmul.f32 %v3626_v9, %v2278_v4 }
 0x21d   :  { %v2257_v13 = vsel %vm2247_vm2, %v2240_v45, %v2207_v20  ;;  %v2081_v48 = vadd.f32 %v2049_v49, %v1809_v52  ;;  %v2258_v16 = vsel %vm2247_vm2, %v2241_v46, %v2208_v5 }
 0x21e   :  { %v2279_v37 = vsub.f32 %v2257_v13, %v3615_v40  ;;  %v2242_v55 = vsel %vm2230_vm1, %v1953_v6, %v2161_v59  ;;  %v2280_v31 = vsub.f32 %v2258_v16, %v3615_v40 }
 0x21f   :  { %v2129_v10 = vadd.f32 %v2097_v34, %v2081_v48 }
 0x220   :  { %v2299_v25 = vmul.f32 %v3626_v9, %v2279_v37  ;;  %v2300_v38 = vmul.f32 %v3626_v9, %v2280_v31 }
 0x221   :  { %v2209_v61 = vrot.slane %v2129_v10, 4 }
 0x222   :  { %v2326_v50 = vcombine.low %v2298_v43, %v2299_v25 }
 0x223   :  { %v2259_v54 = vsel %vm2247_vm2, %v2242_v55, %v2209_v61 }
 0x224   :  { %2342 = vst [vmem:[#allocation5 + $0x20] sm:$0x77] %v2326_v50  ;;  %v2281_v57 = vsub.f32 %v2259_v54, %v3615_v40 }
 0x226   :  { %v2301_v32 = vmul.f32 %v3626_v9, %v2281_v57 }
 0x228   :  { %v2327_v0 = vcombine.low %v2300_v38, %v2301_v32  ;;  %v3921_v32 = vld [vmem:[#allocation48_spill] sm:$0xff] }
 0x22a   :  { %2343 = vst [vmem:[#allocation5 + $0x28] sm:$0x77] %v2327_v0 }
 0x22f   :  { %v1630_v18 = vpop.f32.mrf.mxu0 }
 0x230   :  { %v1746_v29 = vmul.f32 %v1630_v18, %v3383_v47  ;;  %v1826_v27 = vmul.f32 %v1630_v18, %v3387_v58  ;;  %v1730_v1 = vmul.f32 %v1630_v18, %v3101_v17 }
 0x231   :  { %v1632_v52 = vpop.f32.mrf.mxu0 }
 0x232   :  { %v1778_v51 = vrot.slane %v1746_v29, 1  ;;  %v1747_v41 = vmul.f32 %v1632_v52, %v3918_v8  ;;  %v1827_v35 = vmul.f32 %v1632_v52, %v3919_v15  ;;  %v1858_v60 = vrot.slane %v1826_v27, 2 }
 0x233   :  { %v1636_v7 = vpop.f32.mrf.mxu0  ;;  %v1731_v22 = vmul.f32 %v1632_v52, %v3920_v3 }
 0x234   :  { %v1810_v19 = vadd.f32 %v1778_v51, %v1730_v1  ;;  %v1779_v42 = vrot.slane %v1747_v41, 1  ;;  %v2018_v39 = vmul.f32 %v1636_v7, %v3387_v58  ;;  %v1859_v24 = vrot.slane %v1827_v35, 2 }
 0x235   :  { %v1638_v23 = vpop.f32.mrf.mxu0  ;;  %v1970_v53 = vrot.slane %v1636_v7, 7  ;;  %v1922_v44 = vrot.slane %v1636_v7, 1  ;;  %v2098_v26 = vrot.slane %v1636_v7, 5 }
 0x236   :  { %v1890_v47 = vadd.f32 %v1858_v60, %v1810_v19  ;;  %v1811_v62 = vadd.f32 %v1779_v42, %v1731_v22  ;;  %v2050_v30 = vrot.slane %v2018_v39, 2  ;;  %v2019_v17 = vmul.f32 %v1638_v23, %v3919_v15 }
 0x237   :  { %v1971_v63 = vrot.slane %v1638_v23, 7  ;;  %v1923_v20 = vrot.slane %v1638_v23, 1  ;;  %v2099_v46 = vrot.slane %v1638_v23, 5 }
 0x238   :  { %v1891_v36 = vadd.f32 %v1859_v24, %v1811_v62  ;;  %v2002_v11 = vadd.f32 %v1970_v53, %v1890_v47  ;;  %v2082_v14 = vadd.f32 %v2050_v30, %v1810_v19  ;;  %v2051_v45 = vrot.slane %v2019_v17, 2 }
 0x239   :  { %v1954_v21 = vadd.f32 %v1922_v44, %v1890_v47 }
 0x23a   :  { %v2162_v5 = vrot.slane %v2002_v11, 2  ;;  %v2003_v49 = vadd.f32 %v1971_v63, %v1891_v36  ;;  %v2130_v58 = vadd.f32 %v2098_v26, %v2082_v14  ;;  %v2083_v4 = vadd.f32 %v2051_v45, %v1811_v62 }
 0x23b   :  { %v1955_v59 = vadd.f32 %v1923_v20, %v1891_v36 }
 0x23c   :  { %v2243_v33 = vsel %vm2230_vm1, %v1954_v21, %v2162_v5  ;;  %v2163_v13 = vrot.slane %v2003_v49, 2  ;;  %v2210_v48 = vrot.slane %v2130_v58, 4  ;;  %v2131_v34 = vadd.f32 %v2099_v46, %v2083_v4 }
 0x23e   :  { %v2244_v37 = vsel %vm2230_vm1, %v1955_v59, %v2163_v13  ;;  %v2260_v6 = vsel %vm2247_vm2, %v2243_v33, %v2210_v48  ;;  %v2211_v16 = vrot.slane %v2131_v34, 4  ;;  %v1707_v10 = vpop.f32.mrf.mxu1 }
 0x23f   :  { %v2282_v43 = vsub.f32 %v2260_v6, %v3615_v40  ;;  %v1748_v55 = vmul.f32 %v1707_v10, %v3460_v28  ;;  %v1828_v61 = vmul.f32 %v1707_v10, %v3464_v2  ;;  %v1732_v54 = vmul.f32 %v1707_v10, %v3430_v12  ;;  %v3922_v28 = vld [vmem:[#allocation51_spill] sm:$0xff] }
 0x240   :  { %v2261_v25 = vsel %vm2247_vm2, %v2244_v37, %v2211_v16  ;;  %v1709_v31 = vpop.f32.mrf.mxu1 }
 0x241   :  { %v2283_v50 = vsub.f32 %v2261_v25, %v3615_v40  ;;  %v1780_v57 = vrot.slane %v1748_v55, 1  ;;  %v1749_v38 = vmul.f32 %v1709_v31, %v3881_v56  ;;  %v1829_v0 = vmul.f32 %v1709_v31, %v3921_v32 }
 0x242   :  { %v2302_v18 = vmul.f32 %v3626_v9, %v2282_v43  ;;  %v1713_v29 = vpop.f32.mrf.mxu1  ;;  %v1860_v1 = vrot.slane %v1828_v61, 2  ;;  %v1733_v51 = vmul.f32 %v1709_v31, %v3922_v28 }
 0x243   :  { %v2303_v27 = vmul.f32 %v3626_v9, %v2283_v50  ;;  %v1812_v52 = vadd.f32 %v1780_v57, %v1732_v54  ;;  %v1781_v8 = vrot.slane %v1749_v38, 1  ;;  %v2020_v41 = vmul.f32 %v1713_v29, %v3464_v2 }
 0x244   :  { %v1715_v35 = vpop.f32.mrf.mxu1  ;;  %v1861_v19 = vrot.slane %v1829_v0, 2  ;;  %v1972_v56 = vrot.slane %v1713_v29, 7  ;;  %v1924_v42 = vrot.slane %v1713_v29, 1  ;;  %v2100_v62 = vrot.slane %v1713_v29, 5 }
 0x245   :  { %v2328_v15 = vcombine.low %v2302_v18, %v2303_v27  ;;  %v1892_v12 = vadd.f32 %v1860_v1, %v1812_v52  ;;  %v1813_v7 = vadd.f32 %v1781_v8, %v1733_v51  ;;  %v2052_v60 = vrot.slane %v2020_v41, 2 }
 0x246   :  { %v2021_v3 = vmul.f32 %v1715_v35, %v3921_v32  ;;  %v1973_v23 = vrot.slane %v1715_v35, 7  ;;  %v1925_v2 = vrot.slane %v1715_v35, 1  ;;  %v2101_v11 = vrot.slane %v1715_v35, 5 }
 0x247   :  { %2344 = vst [vmem:[#allocation5 + $0x30] sm:$0x77] %v2328_v15  ;;  %v1893_v22 = vadd.f32 %v1861_v19, %v1813_v7  ;;  %v2004_v39 = vadd.f32 %v1972_v56, %v1892_v12  ;;  %v2084_v47 = vadd.f32 %v2052_v60, %v1812_v52  ;;  %v1956_v53 = vadd.f32 %v1924_v42, %v1892_v12 }
 0x248   :  { %v2053_v24 = vrot.slane %v2021_v3, 2 }
 0x249   :  { %v2164_v30 = vrot.slane %v2004_v39, 2  ;;  %v2005_v17 = vadd.f32 %v1973_v23, %v1893_v22  ;;  %v2132_v36 = vadd.f32 %v2100_v62, %v2084_v47  ;;  %v1957_v14 = vadd.f32 %v1925_v2, %v1893_v22 }
 0x24a   :  { %v2085_v44 = vadd.f32 %v2053_v24, %v1813_v7 }
 0x24b   :  { %v2245_v63 = vsel %vm2230_vm1, %v1956_v53, %v2164_v30  ;;  %v2165_v26 = vrot.slane %v2005_v17, 2  ;;  %v2212_v45 = vrot.slane %v2132_v36, 4 }
 0x24c   :  { %v2133_v21 = vadd.f32 %v2101_v11, %v2085_v44 }
 0x24d   :  { %v2246_v5 = vsel %vm2230_vm1, %v1957_v14, %v2165_v26  ;;  %v2262_v20 = vsel %vm2247_vm2, %v2245_v63, %v2212_v45 }
 0x24e   :  { %v2213_v49 = vrot.slane %v2133_v21, 4  ;;  %v2284_v58 = vsub.f32 %v2262_v20, %v3615_v40 }
 0x250   :  { %v2263_v4 = vsel %vm2247_vm2, %v2246_v5, %v2213_v49  ;;  %v2304_v33 = vmul.f32 %v3626_v9, %v2284_v58 }
 0x251   :  { %v2285_v46 = vsub.f32 %v2263_v4, %v3615_v40 }
 0x253   :  { %v2305_v59 = vmul.f32 %v3626_v9, %v2285_v46 }
 0x255   :  { %v2329_v13 = vcombine.low %v2304_v33, %v2305_v59 }
 0x257   :  { %2345 = vst [vmem:[#allocation5 + $0x38] sm:$0x77] %v2329_v13 }
 0x258   :  { %2555 = shalt.err (!%p2552_p9)
}
 0x259   :  { %2355 = dma.vmem_to_hbm [thread:$0]  %s2353_s29, 1024, %s3726_s4, [#allocation4]  }
 0x25a   :  { %2566 = dma.done.wait [#allocation4], 1024  }
 0x25b   :  { %2567 = vsyncadd [#allocation4], 4294966272 }
 0x25c   :  { %2359 = vsyncpa [#allocation3], 1 }
 0x25d   :  { %2360 = vsyncpa [#allocation4], 1 }

</bundles_post_ra>
